<compile_context>
chip_gen: v6e
topology: v6e:2x2x1
jax: 0.10.0
libtpu: 0.0.40
codegen_flags: <defaults>
</compile_context>

<pallas_src>
import functools

import jax
import jax.numpy as jnp
from jax import lax
from jax.experimental import pallas as pl
from jax.experimental.pallas import tpu as pltpu


def _shift_flat(x, s):
    """out[..., i] = x[..., i + s] for 0 <= i + s < n, else 0 (static s)."""
    if s == 0:
        return x
    n = x.shape[-1]
    pad = jnp.zeros(x.shape[:-1] + (abs(s),), x.dtype)
    if s > 0:
        return jnp.concatenate([x[..., s:], pad], axis=-1)
    return jnp.concatenate([pad, x[..., :n + s]], axis=-1)


def _aniso_fused_kernel(x_ref, wsp_ref, bsp_ref, wdp_ref, bdp_ref, mask_ref,
                        out_ref, *, width, compute_dtype):
    # x_ref:    (1, Cin, D, H*W)
    # wsp_ref:  (Cout, 9*Cin)    bsp_ref: (Cout, 1)
    # wdp_ref:  (Cout, 3*Cout)   bdp_ref: (Cout, 1)
    # mask_ref: (2, H*W)   row 0 zeroes w==0, row 1 zeroes w==W-1
    # out_ref:  (1, Cout, D, H*W)
    D = x_ref.shape[2]
    W = width

    wsp = wsp_ref[...].astype(compute_dtype)
    wdp = wdp_ref[...].astype(compute_dtype)
    bsp = bsp_ref[...]            # (Cout, 1) float32
    bdp = bdp_ref[...]
    mask_w0 = mask_ref[0:1, :]    # (1, H*W)
    mask_w1 = mask_ref[1:2, :]

    # -- spatial 1x3x3 conv: one lane-dense K=9*Cin matmul per depth slice ----
    ys = []
    for d in range(D):
        x_d = x_ref[0, :, d, :]                           # (Cin, H*W)
        taps = []
        for kh in range(3):
            for kw in range(3):
                # tap value = x[h + kh - 1, w + kw - 1] (zero outside)
                t = _shift_flat(x_d, (kh - 1) * W + (kw - 1))
                if kw == 0:      # reads x[.., w-1]: output column w==0 is 0
                    t = t * mask_w0
                elif kw == 2:    # reads x[.., w+1]: output column w==W-1 is 0
                    t = t * mask_w1
                taps.append(t)
        xt = jnp.concatenate(taps, axis=0).astype(compute_dtype)   # (9*Cin, H*W)
        ys.append(jnp.dot(wsp, xt, preferred_element_type=jnp.float32) + bsp)

    # -- depth 3x1x1 conv straight from the in-register/VMEM spatial results --
    zero = jnp.zeros_like(ys[0])
    for d in range(D):
        y_prev = ys[d - 1] if d > 0 else zero
        y_next = ys[d + 1] if d + 1 < D else zero
        yt = jnp.concatenate([y_prev, ys[d], y_next],
                             axis=0).astype(compute_dtype)          # (3*Cout, H*W)
        o_d = jnp.dot(wdp, yt, preferred_element_type=jnp.float32) + bdp
        out_ref[0, :, d, :] = o_d.astype(out_ref.dtype)


def anisotropic_conv3d(x_ncdhw, w_sp, b_sp, w_dp, b_dp,
                       compute_dtype=jnp.float32):
    """x_ncdhw: (N, Cin, D, H, W) float32.
       w_sp: (3, 3, Cin, Cout) [kh, kw, i, o]   b_sp: (1, Cout)
       w_dp: (3, Cout, Cout)   [kd, i, o]       b_dp: (1, Cout)
       compute_dtype: MXU operand dtype (jnp.bfloat16 recommended on v6e/v7x;
       accumulation stays float32).  Returns (N, Cout, D, H, W)."""
    N, Cin, D, H, W = x_ncdhw.shape
    Cout = w_sp.shape[-1]
    HW = H * W

    # Free reshape only -- no HBM pad / transpose passes on the activations.
    x_flat = x_ncdhw.reshape(N, Cin, D, HW)

    # Weights in im2col-matching layout: spatial K index = (kh*3+kw)*Cin + ci,
    # depth K index = kd*Cout + ci.
    w_sp_mat = jnp.transpose(w_sp, (3, 0, 1, 2)).reshape(Cout, 9 * Cin)
    w_dp_mat = jnp.transpose(w_dp, (2, 0, 1)).reshape(Cout, 3 * Cout)
    b_sp_col = b_sp.reshape(Cout, 1)
    b_dp_col = b_dp.reshape(Cout, 1)

    # W-boundary masks over the flattened (h*W + w) lane axis.
    col = jnp.arange(HW, dtype=jnp.int32) % W
    wmask = jnp.stack([(col != 0), (col != W - 1)]).astype(x_flat.dtype)  # (2, HW)

    kernel = functools.partial(_aniso_fused_kernel, width=W,
                               compute_dtype=compute_dtype)

    out_flat = pl.pallas_call(
        kernel,
        out_shape=jax.ShapeDtypeStruct((N, Cout, D, HW), x_ncdhw.dtype),
        grid_spec=pltpu.PrefetchScalarGridSpec(
            num_scalar_prefetch=0,
            grid=(N,),
            in_specs=[
                pl.BlockSpec((1, Cin, D, HW), lambda n: (n, 0, 0, 0)),
                pl.BlockSpec((Cout, 9 * Cin), lambda n: (0, 0)),
                pl.BlockSpec((Cout, 1), lambda n: (0, 0)),
                pl.BlockSpec((Cout, 3 * Cout), lambda n: (0, 0)),
                pl.BlockSpec((Cout, 1), lambda n: (0, 0)),
                pl.BlockSpec((2, HW), lambda n: (0, 0)),
            ],
            out_specs=pl.BlockSpec((1, Cout, D, HW), lambda n: (n, 0, 0, 0)),
        ),
        compiler_params=pltpu.CompilerParams(
            dimension_semantics=("parallel",)),
    )(x_flat, w_sp_mat, b_sp_col, w_dp_mat, b_dp_col, wmask)

    # Free reshape back to NCDHW.
    return out_flat.reshape(N, Cout, D, H, W)


# ----------------------------------------------------------------------------
# Pure-JAX reference (lax conv) used only to validate the Pallas path.
# ----------------------------------------------------------------------------
def reference_forward(x_ncdhw, w_sp, b_sp, w_dp, b_dp):
    w_sp_oidhw = jnp.transpose(w_sp, (3, 2, 0, 1))[:, :, None, :, :]  # (O,I,1,3,3)
    y = lax.conv_general_dilated(
        x_ncdhw, w_sp_oidhw, window_strides=(1, 1, 1),
        padding=((0, 0), (1, 1), (1, 1)),
        dimension_numbers=('NCDHW', 'OIDHW', 'NCDHW'))
    y = y + b_sp[0].reshape(1, -1, 1, 1, 1)
    w_dp_oidhw = jnp.transpose(w_dp, (2, 1, 0))[:, :, :, None, None]  # (O,I,3,1,1)
    out = lax.conv_general_dilated(
        y, w_dp_oidhw, window_strides=(1, 1, 1),
        padding=((1, 1), (0, 0), (0, 0)),
        dimension_numbers=('NCDHW', 'OIDHW', 'NCDHW'))
    out = out + b_dp[0].reshape(1, -1, 1, 1, 1)
    return out


if __name__ == "__main__":
    # Small shapes consistent with the module: NCDHW input.
    N, Cin, Cout, D, H, W = 2, 4, 8, 8, 16, 16

    key = jax.random.PRNGKey(0)
    k_x, k_ws, k_bs, k_wd, k_bd = jax.random.split(key, 5)

    x = jax.random.normal(k_x, (N, Cin, D, H, W), dtype=jnp.float32)
    # Deterministic synthetic parameters (shapes match nn.Conv3d weights/biases).
    w_sp = 0.1 * jax.random.normal(k_ws, (3, 3, Cin, Cout), dtype=jnp.float32)
    b_sp = 0.1 * jax.random.normal(k_bs, (1, Cout), dtype=jnp.float32)
    w_dp = 0.1 * jax.random.normal(k_wd, (3, Cout, Cout), dtype=jnp.float32)
    b_dp = 0.1 * jax.random.normal(k_bd, (1, Cout), dtype=jnp.float32)

    out = jax.jit(anisotropic_conv3d)(x, w_sp, b_sp, w_dp, b_dp)
    out = jax.block_until_ready(out)

    ref = jax.block_until_ready(reference_forward(x, w_sp, b_sp, w_dp, b_dp))
    assert out.shape == (N, Cout, D, H, W)
    assert jnp.allclose(out, ref, atol=1e-4, rtol=1e-4)

    print("KERNEL_OK")
</pallas_src>

<mosaic_0001>
module attributes {stable_mosaic.version = 11 : i64} {
  func.func @_aniso_fused_kernel(%arg0: i32, %arg1: memref<1x4x8x256xf32, #tpu.memory_space<vmem>>, %arg2: memref<8x36xf32, #tpu.memory_space<vmem>>, %arg3: memref<8x1xf32, #tpu.memory_space<vmem>>, %arg4: memref<8x24xf32, #tpu.memory_space<vmem>>, %arg5: memref<8x1xf32, #tpu.memory_space<vmem>>, %arg6: memref<2x256xf32, #tpu.memory_space<vmem>>, %arg7: memref<1x8x8x256xf32, #tpu.memory_space<vmem>>) attributes {dimension_semantics = [#tpu.dimension_semantics<parallel>], iteration_bounds = array<i64: 2>, scalar_prefetch = 0 : i64, scratch_operands = 0 : i64, tpu.core_type = #tpu.core_type<tc>, window_params = [{transform_indices = @transform_0, window_bounds = array<i64: 1, 4, 8, 256>}, {pipeline_mode = #tpu.pipeline_mode<synchronous>, transform_indices = @transform_1, window_bounds = array<i64: 8, 36>}, {pipeline_mode = #tpu.pipeline_mode<synchronous>, transform_indices = @transform_2, window_bounds = array<i64: 8, 1>}, {pipeline_mode = #tpu.pipeline_mode<synchronous>, transform_indices = @transform_3, window_bounds = array<i64: 8, 24>}, {pipeline_mode = #tpu.pipeline_mode<synchronous>, transform_indices = @transform_4, window_bounds = array<i64: 8, 1>}, {pipeline_mode = #tpu.pipeline_mode<synchronous>, transform_indices = @transform_5, window_bounds = array<i64: 2, 256>}, {transform_indices = @transform_6, window_bounds = array<i64: 1, 8, 8, 256>}]} {
    %c0 = arith.constant 0 : index
    %c0_0 = arith.constant 0 : index
    %0 = vector.load %arg2[%c0, %c0_0] : memref<8x36xf32, #tpu.memory_space<vmem>>, vector<8x36xf32>
    %c0_1 = arith.constant 0 : index
    %c0_2 = arith.constant 0 : index
    %1 = vector.load %arg4[%c0_1, %c0_2] : memref<8x24xf32, #tpu.memory_space<vmem>>, vector<8x24xf32>
    %c0_3 = arith.constant 0 : index
    %c0_4 = arith.constant 0 : index
    %2 = vector.load %arg3[%c0_3, %c0_4] : memref<8x1xf32, #tpu.memory_space<vmem>>, vector<8x1xf32>
    %c0_5 = arith.constant 0 : index
    %c0_6 = arith.constant 0 : index
    %3 = vector.load %arg5[%c0_5, %c0_6] : memref<8x1xf32, #tpu.memory_space<vmem>>, vector<8x1xf32>
    %c0_7 = arith.constant 0 : index
    %c0_8 = arith.constant 0 : index
    %4 = vector.load %arg6[%c0_7, %c0_8] : memref<2x256xf32, #tpu.memory_space<vmem>>, vector<1x256xf32>
    %c1 = arith.constant 1 : index
    %c0_9 = arith.constant 0 : index
    %5 = vector.load %arg6[%c1, %c0_9] : memref<2x256xf32, #tpu.memory_space<vmem>>, vector<1x256xf32>
    %c0_10 = arith.constant 0 : index
    %c0_11 = arith.constant 0 : index
    %c0_12 = arith.constant 0 : index
    %c0_13 = arith.constant 0 : index
    %6 = vector.load %arg1[%c0_10, %c0_11, %c0_12, %c0_13] : memref<1x4x8x256xf32, #tpu.memory_space<vmem>>, vector<1x4x1x256xf32>
    %7 = vector.shape_cast %6 : vector<1x4x1x256xf32> to vector<4x256xf32>
    %cst = arith.constant 0.000000e+00 : f32
    %8 = vector.broadcast %cst : f32 to vector<4x17xf32>
    %9 = vector.extract_strided_slice %7 {offsets = [0, 0], sizes = [4, 239], strides = [1, 1]} : vector<4x256xf32> to vector<4x239xf32>
    %10 = tpu.concatenate %8, %9 in 1 : vector<4x17xf32>, vector<4x239xf32> -> vector<4x256xf32>
    %11 = vector.broadcast %4 : vector<1x256xf32> to vector<4x256xf32>
    %12 = arith.mulf %10, %11 : vector<4x256xf32>
    %cst_14 = arith.constant 0.000000e+00 : f32
    %13 = vector.broadcast %cst_14 : f32 to vector<4x16xf32>
    %14 = vector.extract_strided_slice %7 {offsets = [0, 0], sizes = [4, 240], strides = [1, 1]} : vector<4x256xf32> to vector<4x240xf32>
    %15 = tpu.concatenate %13, %14 in 1 : vector<4x16xf32>, vector<4x240xf32> -> vector<4x256xf32>
    %cst_15 = arith.constant 0.000000e+00 : f32
    %16 = vector.broadcast %cst_15 : f32 to vector<4x15xf32>
    %17 = vector.extract_strided_slice %7 {offsets = [0, 0], sizes = [4, 241], strides = [1, 1]} : vector<4x256xf32> to vector<4x241xf32>
    %18 = tpu.concatenate %16, %17 in 1 : vector<4x15xf32>, vector<4x241xf32> -> vector<4x256xf32>
    %19 = vector.broadcast %5 : vector<1x256xf32> to vector<4x256xf32>
    %20 = arith.mulf %18, %19 : vector<4x256xf32>
    %cst_16 = arith.constant 0.000000e+00 : f32
    %21 = vector.broadcast %cst_16 : f32 to vector<4x1xf32>
    %22 = vector.extract_strided_slice %7 {offsets = [0, 0], sizes = [4, 255], strides = [1, 1]} : vector<4x256xf32> to vector<4x255xf32>
    %23 = tpu.concatenate %21, %22 in 1 : vector<4x1xf32>, vector<4x255xf32> -> vector<4x256xf32>
    %24 = vector.broadcast %4 : vector<1x256xf32> to vector<4x256xf32>
    %25 = arith.mulf %23, %24 : vector<4x256xf32>
    %cst_17 = arith.constant 0.000000e+00 : f32
    %26 = vector.broadcast %cst_17 : f32 to vector<4x1xf32>
    %27 = vector.extract_strided_slice %7 {offsets = [0, 1], sizes = [4, 255], strides = [1, 1]} : vector<4x256xf32> to vector<4x255xf32>
    %28 = tpu.concatenate %27, %26 in 1 : vector<4x255xf32>, vector<4x1xf32> -> vector<4x256xf32>
    %29 = vector.broadcast %5 : vector<1x256xf32> to vector<4x256xf32>
    %30 = arith.mulf %28, %29 : vector<4x256xf32>
    %cst_18 = arith.constant 0.000000e+00 : f32
    %31 = vector.broadcast %cst_18 : f32 to vector<4x15xf32>
    %32 = vector.extract_strided_slice %7 {offsets = [0, 15], sizes = [4, 241], strides = [1, 1]} : vector<4x256xf32> to vector<4x241xf32>
    %33 = tpu.concatenate %32, %31 in 1 : vector<4x241xf32>, vector<4x15xf32> -> vector<4x256xf32>
    %34 = vector.broadcast %4 : vector<1x256xf32> to vector<4x256xf32>
    %35 = arith.mulf %33, %34 : vector<4x256xf32>
    %cst_19 = arith.constant 0.000000e+00 : f32
    %36 = vector.broadcast %cst_19 : f32 to vector<4x16xf32>
    %37 = vector.extract_strided_slice %7 {offsets = [0, 16], sizes = [4, 240], strides = [1, 1]} : vector<4x256xf32> to vector<4x240xf32>
    %38 = tpu.concatenate %37, %36 in 1 : vector<4x240xf32>, vector<4x16xf32> -> vector<4x256xf32>
    %cst_20 = arith.constant 0.000000e+00 : f32
    %39 = vector.broadcast %cst_20 : f32 to vector<4x17xf32>
    %40 = vector.extract_strided_slice %7 {offsets = [0, 17], sizes = [4, 239], strides = [1, 1]} : vector<4x256xf32> to vector<4x239xf32>
    %41 = tpu.concatenate %40, %39 in 1 : vector<4x239xf32>, vector<4x17xf32> -> vector<4x256xf32>
    %42 = vector.broadcast %5 : vector<1x256xf32> to vector<4x256xf32>
    %43 = arith.mulf %41, %42 : vector<4x256xf32>
    %44 = tpu.concatenate %12, %15, %20, %25, %7, %30, %35, %38, %43 in 0 : vector<4x256xf32>, vector<4x256xf32>, vector<4x256xf32>, vector<4x256xf32>, vector<4x256xf32>, vector<4x256xf32>, vector<4x256xf32>, vector<4x256xf32>, vector<4x256xf32> -> vector<36x256xf32>
    %cst_21 = arith.constant dense<0.000000e+00> : vector<8x256xf32>
    %45 = tpu.matmul %0, %44, %cst_21 {dimension_numbers = #tpu.dot_dimension_numbers<[1], [0], [0], [1], [0, 0, 1, 1], [], []>} : vector<8x36xf32>, vector<36x256xf32>, vector<8x256xf32> -> vector<8x256xf32>
    %46 = vector.broadcast %2 : vector<8x1xf32> to vector<8x256xf32>
    %47 = arith.addf %45, %46 : vector<8x256xf32>
    %c0_22 = arith.constant 0 : index
    %c0_23 = arith.constant 0 : index
    %c1_24 = arith.constant 1 : index
    %c0_25 = arith.constant 0 : index
    %48 = vector.load %arg1[%c0_22, %c0_23, %c1_24, %c0_25] : memref<1x4x8x256xf32, #tpu.memory_space<vmem>>, vector<1x4x1x256xf32>
    %49 = vector.shape_cast %48 : vector<1x4x1x256xf32> to vector<4x256xf32>
    %cst_26 = arith.constant 0.000000e+00 : f32
    %50 = vector.broadcast %cst_26 : f32 to vector<4x17xf32>
    %51 = vector.extract_strided_slice %49 {offsets = [0, 0], sizes = [4, 239], strides = [1, 1]} : vector<4x256xf32> to vector<4x239xf32>
    %52 = tpu.concatenate %50, %51 in 1 : vector<4x17xf32>, vector<4x239xf32> -> vector<4x256xf32>
    %53 = vector.broadcast %4 : vector<1x256xf32> to vector<4x256xf32>
    %54 = arith.mulf %52, %53 : vector<4x256xf32>
    %cst_27 = arith.constant 0.000000e+00 : f32
    %55 = vector.broadcast %cst_27 : f32 to vector<4x16xf32>
    %56 = vector.extract_strided_slice %49 {offsets = [0, 0], sizes = [4, 240], strides = [1, 1]} : vector<4x256xf32> to vector<4x240xf32>
    %57 = tpu.concatenate %55, %56 in 1 : vector<4x16xf32>, vector<4x240xf32> -> vector<4x256xf32>
    %cst_28 = arith.constant 0.000000e+00 : f32
    %58 = vector.broadcast %cst_28 : f32 to vector<4x15xf32>
    %59 = vector.extract_strided_slice %49 {offsets = [0, 0], sizes = [4, 241], strides = [1, 1]} : vector<4x256xf32> to vector<4x241xf32>
    %60 = tpu.concatenate %58, %59 in 1 : vector<4x15xf32>, vector<4x241xf32> -> vector<4x256xf32>
    %61 = vector.broadcast %5 : vector<1x256xf32> to vector<4x256xf32>
    %62 = arith.mulf %60, %61 : vector<4x256xf32>
    %cst_29 = arith.constant 0.000000e+00 : f32
    %63 = vector.broadcast %cst_29 : f32 to vector<4x1xf32>
    %64 = vector.extract_strided_slice %49 {offsets = [0, 0], sizes = [4, 255], strides = [1, 1]} : vector<4x256xf32> to vector<4x255xf32>
    %65 = tpu.concatenate %63, %64 in 1 : vector<4x1xf32>, vector<4x255xf32> -> vector<4x256xf32>
    %66 = vector.broadcast %4 : vector<1x256xf32> to vector<4x256xf32>
    %67 = arith.mulf %65, %66 : vector<4x256xf32>
    %cst_30 = arith.constant 0.000000e+00 : f32
    %68 = vector.broadcast %cst_30 : f32 to vector<4x1xf32>
    %69 = vector.extract_strided_slice %49 {offsets = [0, 1], sizes = [4, 255], strides = [1, 1]} : vector<4x256xf32> to vector<4x255xf32>
    %70 = tpu.concatenate %69, %68 in 1 : vector<4x255xf32>, vector<4x1xf32> -> vector<4x256xf32>
    %71 = vector.broadcast %5 : vector<1x256xf32> to vector<4x256xf32>
    %72 = arith.mulf %70, %71 : vector<4x256xf32>
    %cst_31 = arith.constant 0.000000e+00 : f32
    %73 = vector.broadcast %cst_31 : f32 to vector<4x15xf32>
    %74 = vector.extract_strided_slice %49 {offsets = [0, 15], sizes = [4, 241], strides = [1, 1]} : vector<4x256xf32> to vector<4x241xf32>
    %75 = tpu.concatenate %74, %73 in 1 : vector<4x241xf32>, vector<4x15xf32> -> vector<4x256xf32>
    %76 = vector.broadcast %4 : vector<1x256xf32> to vector<4x256xf32>
    %77 = arith.mulf %75, %76 : vector<4x256xf32>
    %cst_32 = arith.constant 0.000000e+00 : f32
    %78 = vector.broadcast %cst_32 : f32 to vector<4x16xf32>
    %79 = vector.extract_strided_slice %49 {offsets = [0, 16], sizes = [4, 240], strides = [1, 1]} : vector<4x256xf32> to vector<4x240xf32>
    %80 = tpu.concatenate %79, %78 in 1 : vector<4x240xf32>, vector<4x16xf32> -> vector<4x256xf32>
    %cst_33 = arith.constant 0.000000e+00 : f32
    %81 = vector.broadcast %cst_33 : f32 to vector<4x17xf32>
    %82 = vector.extract_strided_slice %49 {offsets = [0, 17], sizes = [4, 239], strides = [1, 1]} : vector<4x256xf32> to vector<4x239xf32>
    %83 = tpu.concatenate %82, %81 in 1 : vector<4x239xf32>, vector<4x17xf32> -> vector<4x256xf32>
    %84 = vector.broadcast %5 : vector<1x256xf32> to vector<4x256xf32>
    %85 = arith.mulf %83, %84 : vector<4x256xf32>
    %86 = tpu.concatenate %54, %57, %62, %67, %49, %72, %77, %80, %85 in 0 : vector<4x256xf32>, vector<4x256xf32>, vector<4x256xf32>, vector<4x256xf32>, vector<4x256xf32>, vector<4x256xf32>, vector<4x256xf32>, vector<4x256xf32>, vector<4x256xf32> -> vector<36x256xf32>
    %cst_34 = arith.constant dense<0.000000e+00> : vector<8x256xf32>
    %87 = tpu.matmul %0, %86, %cst_34 {dimension_numbers = #tpu.dot_dimension_numbers<[1], [0], [0], [1], [0, 0, 1, 1], [], []>} : vector<8x36xf32>, vector<36x256xf32>, vector<8x256xf32> -> vector<8x256xf32>
    %88 = vector.broadcast %2 : vector<8x1xf32> to vector<8x256xf32>
    %89 = arith.addf %87, %88 : vector<8x256xf32>
    %c0_35 = arith.constant 0 : index
    %c0_36 = arith.constant 0 : index
    %c2 = arith.constant 2 : index
    %c0_37 = arith.constant 0 : index
    %90 = vector.load %arg1[%c0_35, %c0_36, %c2, %c0_37] : memref<1x4x8x256xf32, #tpu.memory_space<vmem>>, vector<1x4x1x256xf32>
    %91 = vector.shape_cast %90 : vector<1x4x1x256xf32> to vector<4x256xf32>
    %cst_38 = arith.constant 0.000000e+00 : f32
    %92 = vector.broadcast %cst_38 : f32 to vector<4x17xf32>
    %93 = vector.extract_strided_slice %91 {offsets = [0, 0], sizes = [4, 239], strides = [1, 1]} : vector<4x256xf32> to vector<4x239xf32>
    %94 = tpu.concatenate %92, %93 in 1 : vector<4x17xf32>, vector<4x239xf32> -> vector<4x256xf32>
    %95 = vector.broadcast %4 : vector<1x256xf32> to vector<4x256xf32>
    %96 = arith.mulf %94, %95 : vector<4x256xf32>
    %cst_39 = arith.constant 0.000000e+00 : f32
    %97 = vector.broadcast %cst_39 : f32 to vector<4x16xf32>
    %98 = vector.extract_strided_slice %91 {offsets = [0, 0], sizes = [4, 240], strides = [1, 1]} : vector<4x256xf32> to vector<4x240xf32>
    %99 = tpu.concatenate %97, %98 in 1 : vector<4x16xf32>, vector<4x240xf32> -> vector<4x256xf32>
    %cst_40 = arith.constant 0.000000e+00 : f32
    %100 = vector.broadcast %cst_40 : f32 to vector<4x15xf32>
    %101 = vector.extract_strided_slice %91 {offsets = [0, 0], sizes = [4, 241], strides = [1, 1]} : vector<4x256xf32> to vector<4x241xf32>
    %102 = tpu.concatenate %100, %101 in 1 : vector<4x15xf32>, vector<4x241xf32> -> vector<4x256xf32>
    %103 = vector.broadcast %5 : vector<1x256xf32> to vector<4x256xf32>
    %104 = arith.mulf %102, %103 : vector<4x256xf32>
    %cst_41 = arith.constant 0.000000e+00 : f32
    %105 = vector.broadcast %cst_41 : f32 to vector<4x1xf32>
    %106 = vector.extract_strided_slice %91 {offsets = [0, 0], sizes = [4, 255], strides = [1, 1]} : vector<4x256xf32> to vector<4x255xf32>
    %107 = tpu.concatenate %105, %106 in 1 : vector<4x1xf32>, vector<4x255xf32> -> vector<4x256xf32>
    %108 = vector.broadcast %4 : vector<1x256xf32> to vector<4x256xf32>
    %109 = arith.mulf %107, %108 : vector<4x256xf32>
    %cst_42 = arith.constant 0.000000e+00 : f32
    %110 = vector.broadcast %cst_42 : f32 to vector<4x1xf32>
    %111 = vector.extract_strided_slice %91 {offsets = [0, 1], sizes = [4, 255], strides = [1, 1]} : vector<4x256xf32> to vector<4x255xf32>
    %112 = tpu.concatenate %111, %110 in 1 : vector<4x255xf32>, vector<4x1xf32> -> vector<4x256xf32>
    %113 = vector.broadcast %5 : vector<1x256xf32> to vector<4x256xf32>
    %114 = arith.mulf %112, %113 : vector<4x256xf32>
    %cst_43 = arith.constant 0.000000e+00 : f32
    %115 = vector.broadcast %cst_43 : f32 to vector<4x15xf32>
    %116 = vector.extract_strided_slice %91 {offsets = [0, 15], sizes = [4, 241], strides = [1, 1]} : vector<4x256xf32> to vector<4x241xf32>
    %117 = tpu.concatenate %116, %115 in 1 : vector<4x241xf32>, vector<4x15xf32> -> vector<4x256xf32>
    %118 = vector.broadcast %4 : vector<1x256xf32> to vector<4x256xf32>
    %119 = arith.mulf %117, %118 : vector<4x256xf32>
    %cst_44 = arith.constant 0.000000e+00 : f32
    %120 = vector.broadcast %cst_44 : f32 to vector<4x16xf32>
    %121 = vector.extract_strided_slice %91 {offsets = [0, 16], sizes = [4, 240], strides = [1, 1]} : vector<4x256xf32> to vector<4x240xf32>
    %122 = tpu.concatenate %121, %120 in 1 : vector<4x240xf32>, vector<4x16xf32> -> vector<4x256xf32>
    %cst_45 = arith.constant 0.000000e+00 : f32
    %123 = vector.broadcast %cst_45 : f32 to vector<4x17xf32>
    %124 = vector.extract_strided_slice %91 {offsets = [0, 17], sizes = [4, 239], strides = [1, 1]} : vector<4x256xf32> to vector<4x239xf32>
    %125 = tpu.concatenate %124, %123 in 1 : vector<4x239xf32>, vector<4x17xf32> -> vector<4x256xf32>
    %126 = vector.broadcast %5 : vector<1x256xf32> to vector<4x256xf32>
    %127 = arith.mulf %125, %126 : vector<4x256xf32>
    %128 = tpu.concatenate %96, %99, %104, %109, %91, %114, %119, %122, %127 in 0 : vector<4x256xf32>, vector<4x256xf32>, vector<4x256xf32>, vector<4x256xf32>, vector<4x256xf32>, vector<4x256xf32>, vector<4x256xf32>, vector<4x256xf32>, vector<4x256xf32> -> vector<36x256xf32>
    %cst_46 = arith.constant dense<0.000000e+00> : vector<8x256xf32>
    %129 = tpu.matmul %0, %128, %cst_46 {dimension_numbers = #tpu.dot_dimension_numbers<[1], [0], [0], [1], [0, 0, 1, 1], [], []>} : vector<8x36xf32>, vector<36x256xf32>, vector<8x256xf32> -> vector<8x256xf32>
    %130 = vector.broadcast %2 : vector<8x1xf32> to vector<8x256xf32>
    %131 = arith.addf %129, %130 : vector<8x256xf32>
    %c0_47 = arith.constant 0 : index
    %c0_48 = arith.constant 0 : index
    %c3 = arith.constant 3 : index
    %c0_49 = arith.constant 0 : index
    %132 = vector.load %arg1[%c0_47, %c0_48, %c3, %c0_49] : memref<1x4x8x256xf32, #tpu.memory_space<vmem>>, vector<1x4x1x256xf32>
    %133 = vector.shape_cast %132 : vector<1x4x1x256xf32> to vector<4x256xf32>
    %cst_50 = arith.constant 0.000000e+00 : f32
    %134 = vector.broadcast %cst_50 : f32 to vector<4x17xf32>
    %135 = vector.extract_strided_slice %133 {offsets = [0, 0], sizes = [4, 239], strides = [1, 1]} : vector<4x256xf32> to vector<4x239xf32>
    %136 = tpu.concatenate %134, %135 in 1 : vector<4x17xf32>, vector<4x239xf32> -> vector<4x256xf32>
    %137 = vector.broadcast %4 : vector<1x256xf32> to vector<4x256xf32>
    %138 = arith.mulf %136, %137 : vector<4x256xf32>
    %cst_51 = arith.constant 0.000000e+00 : f32
    %139 = vector.broadcast %cst_51 : f32 to vector<4x16xf32>
    %140 = vector.extract_strided_slice %133 {offsets = [0, 0], sizes = [4, 240], strides = [1, 1]} : vector<4x256xf32> to vector<4x240xf32>
    %141 = tpu.concatenate %139, %140 in 1 : vector<4x16xf32>, vector<4x240xf32> -> vector<4x256xf32>
    %cst_52 = arith.constant 0.000000e+00 : f32
    %142 = vector.broadcast %cst_52 : f32 to vector<4x15xf32>
    %143 = vector.extract_strided_slice %133 {offsets = [0, 0], sizes = [4, 241], strides = [1, 1]} : vector<4x256xf32> to vector<4x241xf32>
    %144 = tpu.concatenate %142, %143 in 1 : vector<4x15xf32>, vector<4x241xf32> -> vector<4x256xf32>
    %145 = vector.broadcast %5 : vector<1x256xf32> to vector<4x256xf32>
    %146 = arith.mulf %144, %145 : vector<4x256xf32>
    %cst_53 = arith.constant 0.000000e+00 : f32
    %147 = vector.broadcast %cst_53 : f32 to vector<4x1xf32>
    %148 = vector.extract_strided_slice %133 {offsets = [0, 0], sizes = [4, 255], strides = [1, 1]} : vector<4x256xf32> to vector<4x255xf32>
    %149 = tpu.concatenate %147, %148 in 1 : vector<4x1xf32>, vector<4x255xf32> -> vector<4x256xf32>
    %150 = vector.broadcast %4 : vector<1x256xf32> to vector<4x256xf32>
    %151 = arith.mulf %149, %150 : vector<4x256xf32>
    %cst_54 = arith.constant 0.000000e+00 : f32
    %152 = vector.broadcast %cst_54 : f32 to vector<4x1xf32>
    %153 = vector.extract_strided_slice %133 {offsets = [0, 1], sizes = [4, 255], strides = [1, 1]} : vector<4x256xf32> to vector<4x255xf32>
    %154 = tpu.concatenate %153, %152 in 1 : vector<4x255xf32>, vector<4x1xf32> -> vector<4x256xf32>
    %155 = vector.broadcast %5 : vector<1x256xf32> to vector<4x256xf32>
    %156 = arith.mulf %154, %155 : vector<4x256xf32>
    %cst_55 = arith.constant 0.000000e+00 : f32
    %157 = vector.broadcast %cst_55 : f32 to vector<4x15xf32>
    %158 = vector.extract_strided_slice %133 {offsets = [0, 15], sizes = [4, 241], strides = [1, 1]} : vector<4x256xf32> to vector<4x241xf32>
    %159 = tpu.concatenate %158, %157 in 1 : vector<4x241xf32>, vector<4x15xf32> -> vector<4x256xf32>
    %160 = vector.broadcast %4 : vector<1x256xf32> to vector<4x256xf32>
    %161 = arith.mulf %159, %160 : vector<4x256xf32>
    %cst_56 = arith.constant 0.000000e+00 : f32
    %162 = vector.broadcast %cst_56 : f32 to vector<4x16xf32>
    %163 = vector.extract_strided_slice %133 {offsets = [0, 16], sizes = [4, 240], strides = [1, 1]} : vector<4x256xf32> to vector<4x240xf32>
    %164 = tpu.concatenate %163, %162 in 1 : vector<4x240xf32>, vector<4x16xf32> -> vector<4x256xf32>
    %cst_57 = arith.constant 0.000000e+00 : f32
    %165 = vector.broadcast %cst_57 : f32 to vector<4x17xf32>
    %166 = vector.extract_strided_slice %133 {offsets = [0, 17], sizes = [4, 239], strides = [1, 1]} : vector<4x256xf32> to vector<4x239xf32>
    %167 = tpu.concatenate %166, %165 in 1 : vector<4x239xf32>, vector<4x17xf32> -> vector<4x256xf32>
    %168 = vector.broadcast %5 : vector<1x256xf32> to vector<4x256xf32>
    %169 = arith.mulf %167, %168 : vector<4x256xf32>
    %170 = tpu.concatenate %138, %141, %146, %151, %133, %156, %161, %164, %169 in 0 : vector<4x256xf32>, vector<4x256xf32>, vector<4x256xf32>, vector<4x256xf32>, vector<4x256xf32>, vector<4x256xf32>, vector<4x256xf32>, vector<4x256xf32>, vector<4x256xf32> -> vector<36x256xf32>
    %cst_58 = arith.constant dense<0.000000e+00> : vector<8x256xf32>
    %171 = tpu.matmul %0, %170, %cst_58 {dimension_numbers = #tpu.dot_dimension_numbers<[1], [0], [0], [1], [0, 0, 1, 1], [], []>} : vector<8x36xf32>, vector<36x256xf32>, vector<8x256xf32> -> vector<8x256xf32>
    %172 = vector.broadcast %2 : vector<8x1xf32> to vector<8x256xf32>
    %173 = arith.addf %171, %172 : vector<8x256xf32>
    %c0_59 = arith.constant 0 : index
    %c0_60 = arith.constant 0 : index
    %c4 = arith.constant 4 : index
    %c0_61 = arith.constant 0 : index
    %174 = vector.load %arg1[%c0_59, %c0_60, %c4, %c0_61] : memref<1x4x8x256xf32, #tpu.memory_space<vmem>>, vector<1x4x1x256xf32>
    %175 = vector.shape_cast %174 : vector<1x4x1x256xf32> to vector<4x256xf32>
    %cst_62 = arith.constant 0.000000e+00 : f32
    %176 = vector.broadcast %cst_62 : f32 to vector<4x17xf32>
    %177 = vector.extract_strided_slice %175 {offsets = [0, 0], sizes = [4, 239], strides = [1, 1]} : vector<4x256xf32> to vector<4x239xf32>
    %178 = tpu.concatenate %176, %177 in 1 : vector<4x17xf32>, vector<4x239xf32> -> vector<4x256xf32>
    %179 = vector.broadcast %4 : vector<1x256xf32> to vector<4x256xf32>
    %180 = arith.mulf %178, %179 : vector<4x256xf32>
    %cst_63 = arith.constant 0.000000e+00 : f32
    %181 = vector.broadcast %cst_63 : f32 to vector<4x16xf32>
    %182 = vector.extract_strided_slice %175 {offsets = [0, 0], sizes = [4, 240], strides = [1, 1]} : vector<4x256xf32> to vector<4x240xf32>
    %183 = tpu.concatenate %181, %182 in 1 : vector<4x16xf32>, vector<4x240xf32> -> vector<4x256xf32>
    %cst_64 = arith.constant 0.000000e+00 : f32
    %184 = vector.broadcast %cst_64 : f32 to vector<4x15xf32>
    %185 = vector.extract_strided_slice %175 {offsets = [0, 0], sizes = [4, 241], strides = [1, 1]} : vector<4x256xf32> to vector<4x241xf32>
    %186 = tpu.concatenate %184, %185 in 1 : vector<4x15xf32>, vector<4x241xf32> -> vector<4x256xf32>
    %187 = vector.broadcast %5 : vector<1x256xf32> to vector<4x256xf32>
    %188 = arith.mulf %186, %187 : vector<4x256xf32>
    %cst_65 = arith.constant 0.000000e+00 : f32
    %189 = vector.broadcast %cst_65 : f32 to vector<4x1xf32>
    %190 = vector.extract_strided_slice %175 {offsets = [0, 0], sizes = [4, 255], strides = [1, 1]} : vector<4x256xf32> to vector<4x255xf32>
    %191 = tpu.concatenate %189, %190 in 1 : vector<4x1xf32>, vector<4x255xf32> -> vector<4x256xf32>
    %192 = vector.broadcast %4 : vector<1x256xf32> to vector<4x256xf32>
    %193 = arith.mulf %191, %192 : vector<4x256xf32>
    %cst_66 = arith.constant 0.000000e+00 : f32
    %194 = vector.broadcast %cst_66 : f32 to vector<4x1xf32>
    %195 = vector.extract_strided_slice %175 {offsets = [0, 1], sizes = [4, 255], strides = [1, 1]} : vector<4x256xf32> to vector<4x255xf32>
    %196 = tpu.concatenate %195, %194 in 1 : vector<4x255xf32>, vector<4x1xf32> -> vector<4x256xf32>
    %197 = vector.broadcast %5 : vector<1x256xf32> to vector<4x256xf32>
    %198 = arith.mulf %196, %197 : vector<4x256xf32>
    %cst_67 = arith.constant 0.000000e+00 : f32
    %199 = vector.broadcast %cst_67 : f32 to vector<4x15xf32>
    %200 = vector.extract_strided_slice %175 {offsets = [0, 15], sizes = [4, 241], strides = [1, 1]} : vector<4x256xf32> to vector<4x241xf32>
    %201 = tpu.concatenate %200, %199 in 1 : vector<4x241xf32>, vector<4x15xf32> -> vector<4x256xf32>
    %202 = vector.broadcast %4 : vector<1x256xf32> to vector<4x256xf32>
    %203 = arith.mulf %201, %202 : vector<4x256xf32>
    %cst_68 = arith.constant 0.000000e+00 : f32
    %204 = vector.broadcast %cst_68 : f32 to vector<4x16xf32>
    %205 = vector.extract_strided_slice %175 {offsets = [0, 16], sizes = [4, 240], strides = [1, 1]} : vector<4x256xf32> to vector<4x240xf32>
    %206 = tpu.concatenate %205, %204 in 1 : vector<4x240xf32>, vector<4x16xf32> -> vector<4x256xf32>
    %cst_69 = arith.constant 0.000000e+00 : f32
    %207 = vector.broadcast %cst_69 : f32 to vector<4x17xf32>
    %208 = vector.extract_strided_slice %175 {offsets = [0, 17], sizes = [4, 239], strides = [1, 1]} : vector<4x256xf32> to vector<4x239xf32>
    %209 = tpu.concatenate %208, %207 in 1 : vector<4x239xf32>, vector<4x17xf32> -> vector<4x256xf32>
    %210 = vector.broadcast %5 : vector<1x256xf32> to vector<4x256xf32>
    %211 = arith.mulf %209, %210 : vector<4x256xf32>
    %212 = tpu.concatenate %180, %183, %188, %193, %175, %198, %203, %206, %211 in 0 : vector<4x256xf32>, vector<4x256xf32>, vector<4x256xf32>, vector<4x256xf32>, vector<4x256xf32>, vector<4x256xf32>, vector<4x256xf32>, vector<4x256xf32>, vector<4x256xf32> -> vector<36x256xf32>
    %cst_70 = arith.constant dense<0.000000e+00> : vector<8x256xf32>
    %213 = tpu.matmul %0, %212, %cst_70 {dimension_numbers = #tpu.dot_dimension_numbers<[1], [0], [0], [1], [0, 0, 1, 1], [], []>} : vector<8x36xf32>, vector<36x256xf32>, vector<8x256xf32> -> vector<8x256xf32>
    %214 = vector.broadcast %2 : vector<8x1xf32> to vector<8x256xf32>
    %215 = arith.addf %213, %214 : vector<8x256xf32>
    %c0_71 = arith.constant 0 : index
    %c0_72 = arith.constant 0 : index
    %c5 = arith.constant 5 : index
    %c0_73 = arith.constant 0 : index
    %216 = vector.load %arg1[%c0_71, %c0_72, %c5, %c0_73] : memref<1x4x8x256xf32, #tpu.memory_space<vmem>>, vector<1x4x1x256xf32>
    %217 = vector.shape_cast %216 : vector<1x4x1x256xf32> to vector<4x256xf32>
    %cst_74 = arith.constant 0.000000e+00 : f32
    %218 = vector.broadcast %cst_74 : f32 to vector<4x17xf32>
    %219 = vector.extract_strided_slice %217 {offsets = [0, 0], sizes = [4, 239], strides = [1, 1]} : vector<4x256xf32> to vector<4x239xf32>
    %220 = tpu.concatenate %218, %219 in 1 : vector<4x17xf32>, vector<4x239xf32> -> vector<4x256xf32>
    %221 = vector.broadcast %4 : vector<1x256xf32> to vector<4x256xf32>
    %222 = arith.mulf %220, %221 : vector<4x256xf32>
    %cst_75 = arith.constant 0.000000e+00 : f32
    %223 = vector.broadcast %cst_75 : f32 to vector<4x16xf32>
    %224 = vector.extract_strided_slice %217 {offsets = [0, 0], sizes = [4, 240], strides = [1, 1]} : vector<4x256xf32> to vector<4x240xf32>
    %225 = tpu.concatenate %223, %224 in 1 : vector<4x16xf32>, vector<4x240xf32> -> vector<4x256xf32>
    %cst_76 = arith.constant 0.000000e+00 : f32
    %226 = vector.broadcast %cst_76 : f32 to vector<4x15xf32>
    %227 = vector.extract_strided_slice %217 {offsets = [0, 0], sizes = [4, 241], strides = [1, 1]} : vector<4x256xf32> to vector<4x241xf32>
    %228 = tpu.concatenate %226, %227 in 1 : vector<4x15xf32>, vector<4x241xf32> -> vector<4x256xf32>
    %229 = vector.broadcast %5 : vector<1x256xf32> to vector<4x256xf32>
    %230 = arith.mulf %228, %229 : vector<4x256xf32>
    %cst_77 = arith.constant 0.000000e+00 : f32
    %231 = vector.broadcast %cst_77 : f32 to vector<4x1xf32>
    %232 = vector.extract_strided_slice %217 {offsets = [0, 0], sizes = [4, 255], strides = [1, 1]} : vector<4x256xf32> to vector<4x255xf32>
    %233 = tpu.concatenate %231, %232 in 1 : vector<4x1xf32>, vector<4x255xf32> -> vector<4x256xf32>
    %234 = vector.broadcast %4 : vector<1x256xf32> to vector<4x256xf32>
    %235 = arith.mulf %233, %234 : vector<4x256xf32>
    %cst_78 = arith.constant 0.000000e+00 : f32
    %236 = vector.broadcast %cst_78 : f32 to vector<4x1xf32>
    %237 = vector.extract_strided_slice %217 {offsets = [0, 1], sizes = [4, 255], strides = [1, 1]} : vector<4x256xf32> to vector<4x255xf32>
    %238 = tpu.concatenate %237, %236 in 1 : vector<4x255xf32>, vector<4x1xf32> -> vector<4x256xf32>
    %239 = vector.broadcast %5 : vector<1x256xf32> to vector<4x256xf32>
    %240 = arith.mulf %238, %239 : vector<4x256xf32>
    %cst_79 = arith.constant 0.000000e+00 : f32
    %241 = vector.broadcast %cst_79 : f32 to vector<4x15xf32>
    %242 = vector.extract_strided_slice %217 {offsets = [0, 15], sizes = [4, 241], strides = [1, 1]} : vector<4x256xf32> to vector<4x241xf32>
    %243 = tpu.concatenate %242, %241 in 1 : vector<4x241xf32>, vector<4x15xf32> -> vector<4x256xf32>
    %244 = vector.broadcast %4 : vector<1x256xf32> to vector<4x256xf32>
    %245 = arith.mulf %243, %244 : vector<4x256xf32>
    %cst_80 = arith.constant 0.000000e+00 : f32
    %246 = vector.broadcast %cst_80 : f32 to vector<4x16xf32>
    %247 = vector.extract_strided_slice %217 {offsets = [0, 16], sizes = [4, 240], strides = [1, 1]} : vector<4x256xf32> to vector<4x240xf32>
    %248 = tpu.concatenate %247, %246 in 1 : vector<4x240xf32>, vector<4x16xf32> -> vector<4x256xf32>
    %cst_81 = arith.constant 0.000000e+00 : f32
    %249 = vector.broadcast %cst_81 : f32 to vector<4x17xf32>
    %250 = vector.extract_strided_slice %217 {offsets = [0, 17], sizes = [4, 239], strides = [1, 1]} : vector<4x256xf32> to vector<4x239xf32>
    %251 = tpu.concatenate %250, %249 in 1 : vector<4x239xf32>, vector<4x17xf32> -> vector<4x256xf32>
    %252 = vector.broadcast %5 : vector<1x256xf32> to vector<4x256xf32>
    %253 = arith.mulf %251, %252 : vector<4x256xf32>
    %254 = tpu.concatenate %222, %225, %230, %235, %217, %240, %245, %248, %253 in 0 : vector<4x256xf32>, vector<4x256xf32>, vector<4x256xf32>, vector<4x256xf32>, vector<4x256xf32>, vector<4x256xf32>, vector<4x256xf32>, vector<4x256xf32>, vector<4x256xf32> -> vector<36x256xf32>
    %cst_82 = arith.constant dense<0.000000e+00> : vector<8x256xf32>
    %255 = tpu.matmul %0, %254, %cst_82 {dimension_numbers = #tpu.dot_dimension_numbers<[1], [0], [0], [1], [0, 0, 1, 1], [], []>} : vector<8x36xf32>, vector<36x256xf32>, vector<8x256xf32> -> vector<8x256xf32>
    %256 = vector.broadcast %2 : vector<8x1xf32> to vector<8x256xf32>
    %257 = arith.addf %255, %256 : vector<8x256xf32>
    %c0_83 = arith.constant 0 : index
    %c0_84 = arith.constant 0 : index
    %c6 = arith.constant 6 : index
    %c0_85 = arith.constant 0 : index
    %258 = vector.load %arg1[%c0_83, %c0_84, %c6, %c0_85] : memref<1x4x8x256xf32, #tpu.memory_space<vmem>>, vector<1x4x1x256xf32>
    %259 = vector.shape_cast %258 : vector<1x4x1x256xf32> to vector<4x256xf32>
    %cst_86 = arith.constant 0.000000e+00 : f32
    %260 = vector.broadcast %cst_86 : f32 to vector<4x17xf32>
    %261 = vector.extract_strided_slice %259 {offsets = [0, 0], sizes = [4, 239], strides = [1, 1]} : vector<4x256xf32> to vector<4x239xf32>
    %262 = tpu.concatenate %260, %261 in 1 : vector<4x17xf32>, vector<4x239xf32> -> vector<4x256xf32>
    %263 = vector.broadcast %4 : vector<1x256xf32> to vector<4x256xf32>
    %264 = arith.mulf %262, %263 : vector<4x256xf32>
    %cst_87 = arith.constant 0.000000e+00 : f32
    %265 = vector.broadcast %cst_87 : f32 to vector<4x16xf32>
    %266 = vector.extract_strided_slice %259 {offsets = [0, 0], sizes = [4, 240], strides = [1, 1]} : vector<4x256xf32> to vector<4x240xf32>
    %267 = tpu.concatenate %265, %266 in 1 : vector<4x16xf32>, vector<4x240xf32> -> vector<4x256xf32>
    %cst_88 = arith.constant 0.000000e+00 : f32
    %268 = vector.broadcast %cst_88 : f32 to vector<4x15xf32>
    %269 = vector.extract_strided_slice %259 {offsets = [0, 0], sizes = [4, 241], strides = [1, 1]} : vector<4x256xf32> to vector<4x241xf32>
    %270 = tpu.concatenate %268, %269 in 1 : vector<4x15xf32>, vector<4x241xf32> -> vector<4x256xf32>
    %271 = vector.broadcast %5 : vector<1x256xf32> to vector<4x256xf32>
    %272 = arith.mulf %270, %271 : vector<4x256xf32>
    %cst_89 = arith.constant 0.000000e+00 : f32
    %273 = vector.broadcast %cst_89 : f32 to vector<4x1xf32>
    %274 = vector.extract_strided_slice %259 {offsets = [0, 0], sizes = [4, 255], strides = [1, 1]} : vector<4x256xf32> to vector<4x255xf32>
    %275 = tpu.concatenate %273, %274 in 1 : vector<4x1xf32>, vector<4x255xf32> -> vector<4x256xf32>
    %276 = vector.broadcast %4 : vector<1x256xf32> to vector<4x256xf32>
    %277 = arith.mulf %275, %276 : vector<4x256xf32>
    %cst_90 = arith.constant 0.000000e+00 : f32
    %278 = vector.broadcast %cst_90 : f32 to vector<4x1xf32>
    %279 = vector.extract_strided_slice %259 {offsets = [0, 1], sizes = [4, 255], strides = [1, 1]} : vector<4x256xf32> to vector<4x255xf32>
    %280 = tpu.concatenate %279, %278 in 1 : vector<4x255xf32>, vector<4x1xf32> -> vector<4x256xf32>
    %281 = vector.broadcast %5 : vector<1x256xf32> to vector<4x256xf32>
    %282 = arith.mulf %280, %281 : vector<4x256xf32>
    %cst_91 = arith.constant 0.000000e+00 : f32
    %283 = vector.broadcast %cst_91 : f32 to vector<4x15xf32>
    %284 = vector.extract_strided_slice %259 {offsets = [0, 15], sizes = [4, 241], strides = [1, 1]} : vector<4x256xf32> to vector<4x241xf32>
    %285 = tpu.concatenate %284, %283 in 1 : vector<4x241xf32>, vector<4x15xf32> -> vector<4x256xf32>
    %286 = vector.broadcast %4 : vector<1x256xf32> to vector<4x256xf32>
    %287 = arith.mulf %285, %286 : vector<4x256xf32>
    %cst_92 = arith.constant 0.000000e+00 : f32
    %288 = vector.broadcast %cst_92 : f32 to vector<4x16xf32>
    %289 = vector.extract_strided_slice %259 {offsets = [0, 16], sizes = [4, 240], strides = [1, 1]} : vector<4x256xf32> to vector<4x240xf32>
    %290 = tpu.concatenate %289, %288 in 1 : vector<4x240xf32>, vector<4x16xf32> -> vector<4x256xf32>
    %cst_93 = arith.constant 0.000000e+00 : f32
    %291 = vector.broadcast %cst_93 : f32 to vector<4x17xf32>
    %292 = vector.extract_strided_slice %259 {offsets = [0, 17], sizes = [4, 239], strides = [1, 1]} : vector<4x256xf32> to vector<4x239xf32>
    %293 = tpu.concatenate %292, %291 in 1 : vector<4x239xf32>, vector<4x17xf32> -> vector<4x256xf32>
    %294 = vector.broadcast %5 : vector<1x256xf32> to vector<4x256xf32>
    %295 = arith.mulf %293, %294 : vector<4x256xf32>
    %296 = tpu.concatenate %264, %267, %272, %277, %259, %282, %287, %290, %295 in 0 : vector<4x256xf32>, vector<4x256xf32>, vector<4x256xf32>, vector<4x256xf32>, vector<4x256xf32>, vector<4x256xf32>, vector<4x256xf32>, vector<4x256xf32>, vector<4x256xf32> -> vector<36x256xf32>
    %cst_94 = arith.constant dense<0.000000e+00> : vector<8x256xf32>
    %297 = tpu.matmul %0, %296, %cst_94 {dimension_numbers = #tpu.dot_dimension_numbers<[1], [0], [0], [1], [0, 0, 1, 1], [], []>} : vector<8x36xf32>, vector<36x256xf32>, vector<8x256xf32> -> vector<8x256xf32>
    %298 = vector.broadcast %2 : vector<8x1xf32> to vector<8x256xf32>
    %299 = arith.addf %297, %298 : vector<8x256xf32>
    %c0_95 = arith.constant 0 : index
    %c0_96 = arith.constant 0 : index
    %c7 = arith.constant 7 : index
    %c0_97 = arith.constant 0 : index
    %300 = vector.load %arg1[%c0_95, %c0_96, %c7, %c0_97] : memref<1x4x8x256xf32, #tpu.memory_space<vmem>>, vector<1x4x1x256xf32>
    %301 = vector.shape_cast %300 : vector<1x4x1x256xf32> to vector<4x256xf32>
    %cst_98 = arith.constant 0.000000e+00 : f32
    %302 = vector.broadcast %cst_98 : f32 to vector<4x17xf32>
    %303 = vector.extract_strided_slice %301 {offsets = [0, 0], sizes = [4, 239], strides = [1, 1]} : vector<4x256xf32> to vector<4x239xf32>
    %304 = tpu.concatenate %302, %303 in 1 : vector<4x17xf32>, vector<4x239xf32> -> vector<4x256xf32>
    %305 = vector.broadcast %4 : vector<1x256xf32> to vector<4x256xf32>
    %306 = arith.mulf %304, %305 : vector<4x256xf32>
    %cst_99 = arith.constant 0.000000e+00 : f32
    %307 = vector.broadcast %cst_99 : f32 to vector<4x16xf32>
    %308 = vector.extract_strided_slice %301 {offsets = [0, 0], sizes = [4, 240], strides = [1, 1]} : vector<4x256xf32> to vector<4x240xf32>
    %309 = tpu.concatenate %307, %308 in 1 : vector<4x16xf32>, vector<4x240xf32> -> vector<4x256xf32>
    %cst_100 = arith.constant 0.000000e+00 : f32
    %310 = vector.broadcast %cst_100 : f32 to vector<4x15xf32>
    %311 = vector.extract_strided_slice %301 {offsets = [0, 0], sizes = [4, 241], strides = [1, 1]} : vector<4x256xf32> to vector<4x241xf32>
    %312 = tpu.concatenate %310, %311 in 1 : vector<4x15xf32>, vector<4x241xf32> -> vector<4x256xf32>
    %313 = vector.broadcast %5 : vector<1x256xf32> to vector<4x256xf32>
    %314 = arith.mulf %312, %313 : vector<4x256xf32>
    %cst_101 = arith.constant 0.000000e+00 : f32
    %315 = vector.broadcast %cst_101 : f32 to vector<4x1xf32>
    %316 = vector.extract_strided_slice %301 {offsets = [0, 0], sizes = [4, 255], strides = [1, 1]} : vector<4x256xf32> to vector<4x255xf32>
    %317 = tpu.concatenate %315, %316 in 1 : vector<4x1xf32>, vector<4x255xf32> -> vector<4x256xf32>
    %318 = vector.broadcast %4 : vector<1x256xf32> to vector<4x256xf32>
    %319 = arith.mulf %317, %318 : vector<4x256xf32>
    %cst_102 = arith.constant 0.000000e+00 : f32
    %320 = vector.broadcast %cst_102 : f32 to vector<4x1xf32>
    %321 = vector.extract_strided_slice %301 {offsets = [0, 1], sizes = [4, 255], strides = [1, 1]} : vector<4x256xf32> to vector<4x255xf32>
    %322 = tpu.concatenate %321, %320 in 1 : vector<4x255xf32>, vector<4x1xf32> -> vector<4x256xf32>
    %323 = vector.broadcast %5 : vector<1x256xf32> to vector<4x256xf32>
    %324 = arith.mulf %322, %323 : vector<4x256xf32>
    %cst_103 = arith.constant 0.000000e+00 : f32
    %325 = vector.broadcast %cst_103 : f32 to vector<4x15xf32>
    %326 = vector.extract_strided_slice %301 {offsets = [0, 15], sizes = [4, 241], strides = [1, 1]} : vector<4x256xf32> to vector<4x241xf32>
    %327 = tpu.concatenate %326, %325 in 1 : vector<4x241xf32>, vector<4x15xf32> -> vector<4x256xf32>
    %328 = vector.broadcast %4 : vector<1x256xf32> to vector<4x256xf32>
    %329 = arith.mulf %327, %328 : vector<4x256xf32>
    %cst_104 = arith.constant 0.000000e+00 : f32
    %330 = vector.broadcast %cst_104 : f32 to vector<4x16xf32>
    %331 = vector.extract_strided_slice %301 {offsets = [0, 16], sizes = [4, 240], strides = [1, 1]} : vector<4x256xf32> to vector<4x240xf32>
    %332 = tpu.concatenate %331, %330 in 1 : vector<4x240xf32>, vector<4x16xf32> -> vector<4x256xf32>
    %cst_105 = arith.constant 0.000000e+00 : f32
    %333 = vector.broadcast %cst_105 : f32 to vector<4x17xf32>
    %334 = vector.extract_strided_slice %301 {offsets = [0, 17], sizes = [4, 239], strides = [1, 1]} : vector<4x256xf32> to vector<4x239xf32>
    %335 = tpu.concatenate %334, %333 in 1 : vector<4x239xf32>, vector<4x17xf32> -> vector<4x256xf32>
    %336 = vector.broadcast %5 : vector<1x256xf32> to vector<4x256xf32>
    %337 = arith.mulf %335, %336 : vector<4x256xf32>
    %338 = tpu.concatenate %306, %309, %314, %319, %301, %324, %329, %332, %337 in 0 : vector<4x256xf32>, vector<4x256xf32>, vector<4x256xf32>, vector<4x256xf32>, vector<4x256xf32>, vector<4x256xf32>, vector<4x256xf32>, vector<4x256xf32>, vector<4x256xf32> -> vector<36x256xf32>
    %cst_106 = arith.constant dense<0.000000e+00> : vector<8x256xf32>
    %339 = tpu.matmul %0, %338, %cst_106 {dimension_numbers = #tpu.dot_dimension_numbers<[1], [0], [0], [1], [0, 0, 1, 1], [], []>} : vector<8x36xf32>, vector<36x256xf32>, vector<8x256xf32> -> vector<8x256xf32>
    %340 = vector.broadcast %2 : vector<8x1xf32> to vector<8x256xf32>
    %341 = arith.addf %339, %340 : vector<8x256xf32>
    %cst_107 = arith.constant 0.000000e+00 : f32
    %342 = vector.broadcast %cst_107 : f32 to vector<8x256xf32>
    %343 = tpu.concatenate %342, %47, %89 in 0 : vector<8x256xf32>, vector<8x256xf32>, vector<8x256xf32> -> vector<24x256xf32>
    %cst_108 = arith.constant dense<0.000000e+00> : vector<8x256xf32>
    %344 = tpu.matmul %1, %343, %cst_108 {dimension_numbers = #tpu.dot_dimension_numbers<[1], [0], [0], [1], [0, 0, 1, 1], [], []>} : vector<8x24xf32>, vector<24x256xf32>, vector<8x256xf32> -> vector<8x256xf32>
    %345 = vector.broadcast %3 : vector<8x1xf32> to vector<8x256xf32>
    %346 = arith.addf %344, %345 : vector<8x256xf32>
    %c0_109 = arith.constant 0 : index
    %c0_110 = arith.constant 0 : index
    %c0_111 = arith.constant 0 : index
    %c0_112 = arith.constant 0 : index
    %347 = vector.load %arg7[%c0_109, %c0_110, %c0_111, %c0_112] : memref<1x8x8x256xf32, #tpu.memory_space<vmem>>, vector<1x8x1x256xf32>
    %348 = vector.shape_cast %347 : vector<1x8x1x256xf32> to vector<8x256xf32>
    %349 = vector.shape_cast %346 : vector<8x256xf32> to vector<1x8x1x256xf32>
    tpu.vector_store %arg7[%c0_109, %c0_110, %c0_111, %c0_112], %349 {strides = array<i32>} : memref<1x8x8x256xf32, #tpu.memory_space<vmem>>, vector<1x8x1x256xf32>,
    %350 = tpu.concatenate %47, %89, %131 in 0 : vector<8x256xf32>, vector<8x256xf32>, vector<8x256xf32> -> vector<24x256xf32>
    %cst_113 = arith.constant dense<0.000000e+00> : vector<8x256xf32>
    %351 = tpu.matmul %1, %350, %cst_113 {dimension_numbers = #tpu.dot_dimension_numbers<[1], [0], [0], [1], [0, 0, 1, 1], [], []>} : vector<8x24xf32>, vector<24x256xf32>, vector<8x256xf32> -> vector<8x256xf32>
    %352 = vector.broadcast %3 : vector<8x1xf32> to vector<8x256xf32>
    %353 = arith.addf %351, %352 : vector<8x256xf32>
    %c0_114 = arith.constant 0 : index
    %c0_115 = arith.constant 0 : index
    %c1_116 = arith.constant 1 : index
    %c0_117 = arith.constant 0 : index
    %354 = vector.load %arg7[%c0_114, %c0_115, %c1_116, %c0_117] : memref<1x8x8x256xf32, #tpu.memory_space<vmem>>, vector<1x8x1x256xf32>
    %355 = vector.shape_cast %354 : vector<1x8x1x256xf32> to vector<8x256xf32>
    %356 = vector.shape_cast %353 : vector<8x256xf32> to vector<1x8x1x256xf32>
    tpu.vector_store %arg7[%c0_114, %c0_115, %c1_116, %c0_117], %356 {strides = array<i32>} : memref<1x8x8x256xf32, #tpu.memory_space<vmem>>, vector<1x8x1x256xf32>,
    %357 = tpu.concatenate %89, %131, %173 in 0 : vector<8x256xf32>, vector<8x256xf32>, vector<8x256xf32> -> vector<24x256xf32>
    %cst_118 = arith.constant dense<0.000000e+00> : vector<8x256xf32>
    %358 = tpu.matmul %1, %357, %cst_118 {dimension_numbers = #tpu.dot_dimension_numbers<[1], [0], [0], [1], [0, 0, 1, 1], [], []>} : vector<8x24xf32>, vector<24x256xf32>, vector<8x256xf32> -> vector<8x256xf32>
    %359 = vector.broadcast %3 : vector<8x1xf32> to vector<8x256xf32>
    %360 = arith.addf %358, %359 : vector<8x256xf32>
    %c0_119 = arith.constant 0 : index
    %c0_120 = arith.constant 0 : index
    %c2_121 = arith.constant 2 : index
    %c0_122 = arith.constant 0 : index
    %361 = vector.load %arg7[%c0_119, %c0_120, %c2_121, %c0_122] : memref<1x8x8x256xf32, #tpu.memory_space<vmem>>, vector<1x8x1x256xf32>
    %362 = vector.shape_cast %361 : vector<1x8x1x256xf32> to vector<8x256xf32>
    %363 = vector.shape_cast %360 : vector<8x256xf32> to vector<1x8x1x256xf32>
    tpu.vector_store %arg7[%c0_119, %c0_120, %c2_121, %c0_122], %363 {strides = array<i32>} : memref<1x8x8x256xf32, #tpu.memory_space<vmem>>, vector<1x8x1x256xf32>,
    %364 = tpu.concatenate %131, %173, %215 in 0 : vector<8x256xf32>, vector<8x256xf32>, vector<8x256xf32> -> vector<24x256xf32>
    %cst_123 = arith.constant dense<0.000000e+00> : vector<8x256xf32>
    %365 = tpu.matmul %1, %364, %cst_123 {dimension_numbers = #tpu.dot_dimension_numbers<[1], [0], [0], [1], [0, 0, 1, 1], [], []>} : vector<8x24xf32>, vector<24x256xf32>, vector<8x256xf32> -> vector<8x256xf32>
    %366 = vector.broadcast %3 : vector<8x1xf32> to vector<8x256xf32>
    %367 = arith.addf %365, %366 : vector<8x256xf32>
    %c0_124 = arith.constant 0 : index
    %c0_125 = arith.constant 0 : index
    %c3_126 = arith.constant 3 : index
    %c0_127 = arith.constant 0 : index
    %368 = vector.load %arg7[%c0_124, %c0_125, %c3_126, %c0_127] : memref<1x8x8x256xf32, #tpu.memory_space<vmem>>, vector<1x8x1x256xf32>
    %369 = vector.shape_cast %368 : vector<1x8x1x256xf32> to vector<8x256xf32>
    %370 = vector.shape_cast %367 : vector<8x256xf32> to vector<1x8x1x256xf32>
    tpu.vector_store %arg7[%c0_124, %c0_125, %c3_126, %c0_127], %370 {strides = array<i32>} : memref<1x8x8x256xf32, #tpu.memory_space<vmem>>, vector<1x8x1x256xf32>,
    %371 = tpu.concatenate %173, %215, %257 in 0 : vector<8x256xf32>, vector<8x256xf32>, vector<8x256xf32> -> vector<24x256xf32>
    %cst_128 = arith.constant dense<0.000000e+00> : vector<8x256xf32>
    %372 = tpu.matmul %1, %371, %cst_128 {dimension_numbers = #tpu.dot_dimension_numbers<[1], [0], [0], [1], [0, 0, 1, 1], [], []>} : vector<8x24xf32>, vector<24x256xf32>, vector<8x256xf32> -> vector<8x256xf32>
    %373 = vector.broadcast %3 : vector<8x1xf32> to vector<8x256xf32>
    %374 = arith.addf %372, %373 : vector<8x256xf32>
    %c0_129 = arith.constant 0 : index
    %c0_130 = arith.constant 0 : index
    %c4_131 = arith.constant 4 : index
    %c0_132 = arith.constant 0 : index
    %375 = vector.load %arg7[%c0_129, %c0_130, %c4_131, %c0_132] : memref<1x8x8x256xf32, #tpu.memory_space<vmem>>, vector<1x8x1x256xf32>
    %376 = vector.shape_cast %375 : vector<1x8x1x256xf32> to vector<8x256xf32>
    %377 = vector.shape_cast %374 : vector<8x256xf32> to vector<1x8x1x256xf32>
    tpu.vector_store %arg7[%c0_129, %c0_130, %c4_131, %c0_132], %377 {strides = array<i32>} : memref<1x8x8x256xf32, #tpu.memory_space<vmem>>, vector<1x8x1x256xf32>,
    %378 = tpu.concatenate %215, %257, %299 in 0 : vector<8x256xf32>, vector<8x256xf32>, vector<8x256xf32> -> vector<24x256xf32>
    %cst_133 = arith.constant dense<0.000000e+00> : vector<8x256xf32>
    %379 = tpu.matmul %1, %378, %cst_133 {dimension_numbers = #tpu.dot_dimension_numbers<[1], [0], [0], [1], [0, 0, 1, 1], [], []>} : vector<8x24xf32>, vector<24x256xf32>, vector<8x256xf32> -> vector<8x256xf32>
    %380 = vector.broadcast %3 : vector<8x1xf32> to vector<8x256xf32>
    %381 = arith.addf %379, %380 : vector<8x256xf32>
    %c0_134 = arith.constant 0 : index
    %c0_135 = arith.constant 0 : index
    %c5_136 = arith.constant 5 : index
    %c0_137 = arith.constant 0 : index
    %382 = vector.load %arg7[%c0_134, %c0_135, %c5_136, %c0_137] : memref<1x8x8x256xf32, #tpu.memory_space<vmem>>, vector<1x8x1x256xf32>
    %383 = vector.shape_cast %382 : vector<1x8x1x256xf32> to vector<8x256xf32>
    %384 = vector.shape_cast %381 : vector<8x256xf32> to vector<1x8x1x256xf32>
    tpu.vector_store %arg7[%c0_134, %c0_135, %c5_136, %c0_137], %384 {strides = array<i32>} : memref<1x8x8x256xf32, #tpu.memory_space<vmem>>, vector<1x8x1x256xf32>,
    %385 = tpu.concatenate %257, %299, %341 in 0 : vector<8x256xf32>, vector<8x256xf32>, vector<8x256xf32> -> vector<24x256xf32>
    %cst_138 = arith.constant dense<0.000000e+00> : vector<8x256xf32>
    %386 = tpu.matmul %1, %385, %cst_138 {dimension_numbers = #tpu.dot_dimension_numbers<[1], [0], [0], [1], [0, 0, 1, 1], [], []>} : vector<8x24xf32>, vector<24x256xf32>, vector<8x256xf32> -> vector<8x256xf32>
    %387 = vector.broadcast %3 : vector<8x1xf32> to vector<8x256xf32>
    %388 = arith.addf %386, %387 : vector<8x256xf32>
    %c0_139 = arith.constant 0 : index
    %c0_140 = arith.constant 0 : index
    %c6_141 = arith.constant 6 : index
    %c0_142 = arith.constant 0 : index
    %389 = vector.load %arg7[%c0_139, %c0_140, %c6_141, %c0_142] : memref<1x8x8x256xf32, #tpu.memory_space<vmem>>, vector<1x8x1x256xf32>
    %390 = vector.shape_cast %389 : vector<1x8x1x256xf32> to vector<8x256xf32>
    %391 = vector.shape_cast %388 : vector<8x256xf32> to vector<1x8x1x256xf32>
    tpu.vector_store %arg7[%c0_139, %c0_140, %c6_141, %c0_142], %391 {strides = array<i32>} : memref<1x8x8x256xf32, #tpu.memory_space<vmem>>, vector<1x8x1x256xf32>,
    %392 = tpu.concatenate %299, %341, %342 in 0 : vector<8x256xf32>, vector<8x256xf32>, vector<8x256xf32> -> vector<24x256xf32>
    %cst_143 = arith.constant dense<0.000000e+00> : vector<8x256xf32>
    %393 = tpu.matmul %1, %392, %cst_143 {dimension_numbers = #tpu.dot_dimension_numbers<[1], [0], [0], [1], [0, 0, 1, 1], [], []>} : vector<8x24xf32>, vector<24x256xf32>, vector<8x256xf32> -> vector<8x256xf32>
    %394 = vector.broadcast %3 : vector<8x1xf32> to vector<8x256xf32>
    %395 = arith.addf %393, %394 : vector<8x256xf32>
    %c0_144 = arith.constant 0 : index
    %c0_145 = arith.constant 0 : index
    %c7_146 = arith.constant 7 : index
    %c0_147 = arith.constant 0 : index
    %396 = vector.load %arg7[%c0_144, %c0_145, %c7_146, %c0_147] : memref<1x8x8x256xf32, #tpu.memory_space<vmem>>, vector<1x8x1x256xf32>
    %397 = vector.shape_cast %396 : vector<1x8x1x256xf32> to vector<8x256xf32>
    %398 = vector.shape_cast %395 : vector<8x256xf32> to vector<1x8x1x256xf32>
    tpu.vector_store %arg7[%c0_144, %c0_145, %c7_146, %c0_147], %398 {strides = array<i32>} : memref<1x8x8x256xf32, #tpu.memory_space<vmem>>, vector<1x8x1x256xf32>,
    return
  }
  func.func @transform_0(%arg0: i32) -> (i32, i32, i32, i32) {
    %c0_i32 = arith.constant 0 : i32
    %c0_i32_0 = arith.constant 0 : i32
    %c0_i32_1 = arith.constant 0 : i32
    %c0_i32_2 = arith.constant 0 : i32
    return %arg0, %c0_i32, %c0_i32_0, %c0_i32_1 : i32, i32, i32, i32
  }
  func.func @transform_1(%arg0: i32) -> (i32, i32) {
    %c0_i32 = arith.constant 0 : i32
    %c0_i32_0 = arith.constant 0 : i32
    %c0_i32_1 = arith.constant 0 : i32
    return %c0_i32, %c0_i32_0 : i32, i32
  }
  func.func @transform_2(%arg0: i32) -> (i32, i32) {
    %c0_i32 = arith.constant 0 : i32
    %c0_i32_0 = arith.constant 0 : i32
    %c0_i32_1 = arith.constant 0 : i32
    return %c0_i32, %c0_i32_0 : i32, i32
  }
  func.func @transform_3(%arg0: i32) -> (i32, i32) {
    %c0_i32 = arith.constant 0 : i32
    %c0_i32_0 = arith.constant 0 : i32
    %c0_i32_1 = arith.constant 0 : i32
    return %c0_i32, %c0_i32_0 : i32, i32
  }
  func.func @transform_4(%arg0: i32) -> (i32, i32) {
    %c0_i32 = arith.constant 0 : i32
    %c0_i32_0 = arith.constant 0 : i32
    %c0_i32_1 = arith.constant 0 : i32
    return %c0_i32, %c0_i32_0 : i32, i32
  }
  func.func @transform_5(%arg0: i32) -> (i32, i32) {
    %c0_i32 = arith.constant 0 : i32
    %c0_i32_0 = arith.constant 0 : i32
    %c0_i32_1 = arith.constant 0 : i32
    return %c0_i32, %c0_i32_0 : i32, i32
  }
  func.func @transform_6(%arg0: i32) -> (i32, i32, i32, i32) {
    %c0_i32 = arith.constant 0 : i32
    %c0_i32_0 = arith.constant 0 : i32
    %c0_i32_1 = arith.constant 0 : i32
    %c0_i32_2 = arith.constant 0 : i32
    return %arg0, %c0_i32, %c0_i32_0, %c0_i32_1 : i32, i32, i32, i32
  }
}

</mosaic_0001>

<bundles_post_ra>
// kernel: anisotropic_conv3d.1
= control target key start
LH: loop header
LB: loop body
LE: loop exit
PB: predicated region body
PF: predicated region fallthrough
CT: control target
= control target key end

     0   :  { %s3637_s21 = smov 0   ;;  %s4729_s0 = inlined_call_operand.vmem [shape: f32[2,4,8,256], index: 0, kind: input, shape index: {}]   ;;  %s4730_s1 = inlined_call_operand.vmem [shape: f32[8,36], index: 1, kind: input, shape index: {}]   ;;  %s4731_s2 = inlined_call_operand.vmem [shape: f32[8,1], index: 2, kind: input, shape index: {}]   ;;  %s4732_s3 = inlined_call_operand.vmem [shape: f32[8,24], index: 3, kind: input, shape index: {}]   ;;  %s4733_s4 = inlined_call_operand.vmem [shape: f32[8,1], index: 4, kind: input, shape index: {}]   ;;  %s4734_s5 = inlined_call_operand.vmem [shape: f32[2,256], index: 5, kind: input, shape index: {}]   ;;  %s4735_s6 = inlined_call_operand.vmem [shape: f32[2,8,8,256], index: 6, kind: output, shape index: {}]  }
   0x1 LB: > { %s3421_s22 = sadd.s32 4294967295, %s3589_s21   ;;  %p3425_p0 = scmp.ge.s32.totalorder %s3589_s21, 1  ;;  %s3589_s21 = sphi %s3637_s21, %s16_s21  }
   0x2   : > { %p212_p1 = scmp.lt.s32.totalorder %s3589_s21, 3 }
   0x4   : > { %p213_p2 = pnand %p3425_p0, %p212_p1 }
   0x5   : > { %p242_p3 = scmp.lt.s32.totalorder (!%p213_p2), %s3421_s22, 1  ;;  %s3592_s27 = smov (!%p213_p2), 113  }
   0x6   : > { %216 = sbr.rel (%p213_p2) target bundleno = 810 (0x32a), region = 44  ;;  %s3593_s28 = smov (!%p213_p2), 111  }
   0x7   : > { %s3594_s29 = smov (!%p213_p2), 112   ;;  %s3595_s30 = smov (!%p213_p2), 127  }
   0x8   : > { %s3596_s7 = smov (!%p213_p2), 1   ;;  %s3597_s8 = smov (!%p213_p2), 15  }
   0x9   : > { %s3598_s9 = smov (!%p213_p2), 17   ;;  %s3599_s10 = smov (!%p213_p2), 16  }
   0xb   : > { %v275_v0 = vlaneseq  ;;  %v3591_v1 = vmov 1966171168   ;;  %s4739_s22 = smov (!%p242_p3, %s3421_s22), 1  ;;  %v3600_v40 = vmov 0.0   ;;  %vm399_vm0 = vcmask 908288  }
   0xc   : > { %v273_v2 = vunpack.c.l.s4 %v3591_v1  ;;  %s3559_s23 = sshll.u32 %s4739_s22, 6  ;;  %518 = vmatprep.mubr.f32.mxu0 %v3600_v40  ;;  %745 = vmatprep.mubr.f32.mxu1 %v3600_v40  ;;  %v3430_v1 = vld [vmem:[%s4734_s5 + $0x1] ss:$2 sm:$0x3]  ;;  %vm430_vm1 = vcmask 1043456   ;;  %vm391_vm2 = vcmask 916480  }
   0xd   : > { %v3648_v3 = vshrl.u32 %v275_v0, 7  ;;  %s3654_s26 = scalar_lea.vmem %s4729_s0, %s3559_s23  ;;  %vm380_vm3 = vcmask 924672   ;;  %vm369_vm4 = vcmask 1039360   ;;  %vm358_vm5 = vcmask 7168  }
   0xe   : > { %v274_v4 = vunpack.c.0.s8 %v273_v2  ;;  %v259_v6 = vld [vmem:[%s3654_s26] ss:$8 sm:$0x3]  ;;  %v3431_v7 = vld [vmem:[%s3654_s26 + $0x10] ss:$8 sm:$0x3] }
   0xf   : > { %v3432_v8 = vld [vmem:[%s3654_s26 + $0x20] ss:$8 sm:$0x3]  ;;  %v3433_v9 = vld [vmem:[%s3654_s26 + $0x30] ss:$8 sm:$0x3]  ;;  %v270_v10 = vcombine.low %v259_v6, %v3431_v7 }
  0x10   : > { %v3657_v5 = vsub.s32 %v274_v4, %v3648_v3  ;;  %v271_v11 = vcombine.low %v3432_v8, %v3433_v9  ;;  %v3437_v17 = vld [vmem:[%s3654_s26 + $0x1] ss:$8 sm:$0x3]  ;;  %v3438_v18 = vld [vmem:[%s3654_s26 + $0x11] ss:$8 sm:$0x3] }
  0x11   : > { %v3439_v19 = vld [vmem:[%s3654_s26 + $0x21] ss:$8 sm:$0x3]  ;;  %v3440_v20 = vld [vmem:[%s3654_s26 + $0x31] ss:$8 sm:$0x3]  ;;  %v537_v22 = vcombine.low %v3437_v17, %v3438_v18 }
  0x12   : > { %v278_v12 = vrot.slane %v270_v10, %v3657_v5  ;;  %v285_v13 = vrot.slane %v271_v11, %v3657_v5  ;;  %v538_v23 = vcombine.low %v3439_v19, %v3440_v20  ;;  %v3444_v30 = vld [vmem:[%s3654_s26 + $0x2] ss:$8 sm:$0x3]  ;;  %v3445_v31 = vld [vmem:[%s3654_s26 + $0x12] ss:$8 sm:$0x3] }
  0x13   : > { %v545_v24 = vrot.slane %v537_v22, %v3657_v5  ;;  %v3446_v32 = vld [vmem:[%s3654_s26 + $0x22] ss:$8 sm:$0x3]  ;;  %v3447_v33 = vld [vmem:[%s3654_s26 + $0x32] ss:$8 sm:$0x3]  ;;  %v764_v34 = vcombine.low %v3444_v30, %v3445_v31 }
  0x14   : > { %v287_v14 = vcombine.high %v278_v12, %v285_v13  ;;  %v286_v16 = vcombine.low %v278_v12, %v285_v13  ;;  %v552_v25 = vrot.slane %v538_v23, %v3657_v5  ;;  %v765_v35 = vcombine.low %v3446_v32, %v3447_v33  ;;  %v3451_v42 = vld [vmem:[%s3654_s26 + $0x3] ss:$8 sm:$0x3]  ;;  %v3452_v43 = vld [vmem:[%s3654_s26 + $0x13] ss:$8 sm:$0x3] }
  0x15   : > { %v772_v36 = vrot.slane %v764_v34, %v3657_v5  ;;  %v3453_v44 = vld [vmem:[%s3654_s26 + $0x23] ss:$8 sm:$0x3]  ;;  %v3454_v45 = vld [vmem:[%s3654_s26 + $0x33] ss:$8 sm:$0x3]  ;;  %v991_v47 = vcombine.low %v3451_v42, %v3452_v43 }
  0x16   : > { %v3666_v15 = vrot.slane %v287_v14, %v3657_v5  ;;  %v3681_v21 = vrot.slane %v286_v16, %v3657_v5  ;;  %v554_v26 = vcombine.high %v545_v24, %v552_v25  ;;  %v553_v28 = vcombine.low %v545_v24, %v552_v25  ;;  %v3458_v55 = vld [vmem:[%s3654_s26 + $0x4] ss:$8 sm:$0x3]  ;;  %v3459_v56 = vld [vmem:[%s3654_s26 + $0x14] ss:$8 sm:$0x3] }
  0x17   : > { %v779_v37 = vrot.slane %v765_v35, %v3657_v5  ;;  %v992_v48 = vcombine.low %v3453_v44, %v3454_v45  ;;  %v999_v49 = vrot.slane %v991_v47, %v3657_v5  ;;  %v3460_v57 = vld [vmem:[%s3654_s26 + $0x24] ss:$8 sm:$0x3]  ;;  %v3461_v58 = vld [vmem:[%s3654_s26 + $0x34] ss:$8 sm:$0x3]  ;;  %v1218_v59 = vcombine.low %v3458_v55, %v3459_v56 }
  0x18   : > { %378 = vrot.lane.b32.xlu1 %v3666_v15, %s3592_s27  ;;  %397 = vrot.lane.b32.xlu0 %v3666_v15, %s3593_s28  ;;  %v3698_v27 = vrot.slane %v554_v26, %v3657_v5  ;;  %v3713_v29 = vrot.slane %v553_v28, %v3657_v5  ;;  %v1219_v60 = vcombine.low %v3460_v57, %v3461_v58  ;;  %v318_v61 = vsub.s32 1, %v3648_v3  ;;  %v256_v12 = vld [vmem:[%s4734_s5] ss:$2 sm:$0x3] }
  0x19   : > { %v781_v38 = vcombine.high %v772_v36, %v779_v37  ;;  %v780_v41 = vcombine.low %v772_v36, %v779_v37  ;;  %v1006_v50 = vrot.slane %v992_v48, %v3657_v5  ;;  %v3827_v62 = vrot.slane %v1218_v59, %v3657_v5  ;;  %v3467_v47 = vld [vmem:[%s3654_s26 + $0x25] ss:$8 sm:$0x3] }
  0x1a   : > { %v3830_v63 = vrot.slane %v1219_v60, %v3657_v5  ;;  %v3839_v2 = vrot.slane %v3430_v1, %v318_v61  ;;  %v314_v11 = vsub.s32 0, %v3648_v3  ;;  %v3858_v17 = vrot.slane %v256_v12, %v318_v61 }
  0x1b   : > { %v3746_v39 = vrot.slane %v781_v38, %v3657_v5  ;;  %v3771_v46 = vrot.slane %v780_v41, %v3657_v5  ;;  %v1008_v51 = vcombine.high %v999_v49, %v1006_v50  ;;  %v1007_v53 = vcombine.low %v999_v49, %v1006_v50  ;;  %v3465_v38 = vld [vmem:[%s3654_s26 + $0x5] ss:$8 sm:$0x3]  ;;  %v3466_v41 = vld [vmem:[%s3654_s26 + $0x15] ss:$8 sm:$0x3] }
  0x1c   : > { %389 = vrot.lane.b32.xlu1 %v3666_v15, %s3594_s29  ;;  %367 = vrot.lane.b32.xlu0 %v3666_v15, %s3595_s30  ;;  %v1235_v4 = vcombine.high %v3827_v62, %v3830_v63  ;;  %v3864_v3 = vrot.slane %v3430_v1, %v314_v11  ;;  %v3870_v26 = vrot.slane %v256_v12, %v314_v11  ;;  %v3468_v49 = vld [vmem:[%s3654_s26 + $0x35] ss:$8 sm:$0x3]  ;;  %vm336_vm6 = vcmask 121856  }
  0x1d   : > { %v3788_v52 = vrot.slane %v1008_v51, %v3657_v5  ;;  %v3803_v54 = vrot.slane %v1007_v53, %v3657_v5  ;;  %v1234_v45 = vcombine.low %v3827_v62, %v3830_v63  ;;  %v1445_v55 = vcombine.low %v3465_v38, %v3466_v41 }
  0x1e   : > { %v3850_v10 = vrot.slane %v1235_v4, %v3657_v5  ;;  %v1446_v58 = vcombine.low %v3467_v47, %v3468_v49  ;;  %vm306_vm7 = vcmask 138240   ;;  %vm328_vm8 = vcmask 130048  }
  0x1f   : > { %v3903_v57 = vrot.slane %v1234_v45, %v3657_v5  ;;  %vm444_vm9 = vcmask 293888   ;;  %vm2119_vm10 = vcmask 195584   ;;  %vm4470_vm11 = vcmp.lt.s32.totalorder %v275_v0, 256 }
  0x20   : > { %365 = vrot.lane.b32.xlu1 %v3681_v21, %s3595_s30  ;;  %395 = vrot.lane.b32.xlu0 %v3681_v21, %s3593_s28 }
  0x24   : > { %387 = vrot.lane.b32.xlu1 %v3681_v21, %s3594_s29  ;;  %376 = vrot.lane.b32.xlu0 %v3681_v21, %s3592_s27 }
  0x28   : > { %356 = vrot.lane.b32.xlu1 %v3666_v15, %s3596_s7  ;;  %354 = vrot.lane.b32.xlu0 %v3681_v21, %s3596_s7 }
  0x2c   : > { %332 = vrot.lane.b32.xlu1 %v3681_v21, %s3597_s8  ;;  %635 = vrot.lane.b32.xlu0 %v3698_v27, %s3593_s28 }
  0x30   : > { %608 = vrot.lane.b32.xlu1 %v3698_v27, %s3595_s30  ;;  %334 = vrot.lane.b32.xlu0 %v3666_v15, %s3597_s8 }
  0x34   : > { %628 = vrot.lane.b32.xlu1 %v3698_v27, %s3594_s29  ;;  %618 = vrot.lane.b32.xlu0 %v3698_v27, %s3592_s27 }
  0x38   : > { %606 = vrot.lane.b32.xlu1 %v3713_v29, %s3595_s30  ;;  %633 = vrot.lane.b32.xlu0 %v3713_v29, %s3593_s28 }
  0x3c   : > { %626 = vrot.lane.b32.xlu1 %v3713_v29, %s3594_s29  ;;  %616 = vrot.lane.b32.xlu0 %v3713_v29, %s3592_s27 }
  0x40   : > { %304 = vrot.lane.b32.xlu1 %v3666_v15, %s3598_s9  ;;  %302 = vrot.lane.b32.xlu0 %v3681_v21, %s3598_s9 }
  0x44   : > { %326 = vrot.lane.b32.xlu1 %v3666_v15, %s3599_s10  ;;  %324 = vrot.lane.b32.xlu0 %v3681_v21, %s3599_s10 }
  0x48   : > { %598 = vrot.lane.b32.xlu1 %v3698_v27, %s3596_s7  ;;  %596 = vrot.lane.b32.xlu0 %v3713_v29, %s3596_s7 }
  0x4c   : > { %588 = vrot.lane.b32.xlu1 %v3698_v27, %s3597_s8  ;;  %586 = vrot.lane.b32.xlu0 %v3713_v29, %s3597_s8 }
  0x50   : > { %569 = vrot.lane.b32.xlu1 %v3713_v29, %s3598_s9  ;;  %862 = vrot.lane.b32.xlu0 %v3746_v39, %s3593_s28 }
  0x54   : > { %579 = vrot.lane.b32.xlu1 %v3713_v29, %s3599_s10  ;;  %571 = vrot.lane.b32.xlu0 %v3698_v27, %s3598_s9 }
  0x58   : > { %835 = vrot.lane.b32.xlu1 %v3746_v39, %s3595_s30  ;;  %581 = vrot.lane.b32.xlu0 %v3698_v27, %s3599_s10 }
  0x5c   : > { %855 = vrot.lane.b32.xlu1 %v3746_v39, %s3594_s29  ;;  %845 = vrot.lane.b32.xlu0 %v3746_v39, %s3592_s27 }
  0x60   : > { %833 = vrot.lane.b32.xlu1 %v3771_v46, %s3595_s30  ;;  %860 = vrot.lane.b32.xlu0 %v3771_v46, %s3593_s28 }
  0x64   : > { %853 = vrot.lane.b32.xlu1 %v3771_v46, %s3594_s29  ;;  %843 = vrot.lane.b32.xlu0 %v3771_v46, %s3592_s27 }
  0x68   : > { %825 = vrot.lane.b32.xlu1 %v3746_v39, %s3596_s7  ;;  %823 = vrot.lane.b32.xlu0 %v3771_v46, %s3596_s7 }
  0x6c   : > { %813 = vrot.lane.b32.xlu1 %v3771_v46, %s3597_s8  ;;  %1089 = vrot.lane.b32.xlu0 %v3788_v52, %s3593_s28 }
  0x70   : > { %1062 = vrot.lane.b32.xlu1 %v3788_v52, %s3595_s30  ;;  %815 = vrot.lane.b32.xlu0 %v3746_v39, %s3597_s8 }
  0x74   : > { %1082 = vrot.lane.b32.xlu1 %v3788_v52, %s3594_s29  ;;  %1072 = vrot.lane.b32.xlu0 %v3788_v52, %s3592_s27 }
  0x78   : > { %1060 = vrot.lane.b32.xlu1 %v3803_v54, %s3595_s30  ;;  %1087 = vrot.lane.b32.xlu0 %v3803_v54, %s3593_s28 }
  0x7c   : > { %1080 = vrot.lane.b32.xlu1 %v3803_v54, %s3594_s29  ;;  %1070 = vrot.lane.b32.xlu0 %v3803_v54, %s3592_s27 }
  0x80   : > { %798 = vrot.lane.b32.xlu1 %v3746_v39, %s3598_s9  ;;  %796 = vrot.lane.b32.xlu0 %v3771_v46, %s3598_s9 }
  0x84   : > { %808 = vrot.lane.b32.xlu1 %v3746_v39, %s3599_s10  ;;  %806 = vrot.lane.b32.xlu0 %v3771_v46, %s3599_s10 }
  0x88   : > { %1052 = vrot.lane.b32.xlu1 %v3788_v52, %s3596_s7  ;;  %1050 = vrot.lane.b32.xlu0 %v3803_v54, %s3596_s7 }
  0x8a   : > { %v379_v6 = vpop.permute.xlu1 %378  ;;  %v398_v7 = vpop.permute.xlu0 %397 }
  0x8b   : > { %v403_v8 = vsel %vm399_vm0, %v398_v7, 0.0  ;;  %v384_v18 = vsel %vm380_vm3, %v379_v6, 0.0 }
  0x8c   : > { %1042 = vrot.lane.b32.xlu1 %v3788_v52, %s3597_s8  ;;  %1040 = vrot.lane.b32.xlu0 %v3803_v54, %s3597_s8  ;;  %v405_v9 = vmul.f32 %v403_v8, %v3839_v2  ;;  %v386_v28 = vmul.f32 %v384_v18, %v3858_v17 }
  0x8e   : > { %v390_v13 = vpop.permute.xlu1 %389  ;;  %3434 = vmatprep.subr.msk.mxu0 %vm430_vm1, %v405_v9  ;;  %v368_v14 = vpop.permute.xlu0 %367 }
  0x8f   : > { %v394_v16 = vsel %vm391_vm2, %v390_v13, 0.0  ;;  %v373_v19 = vsel %vm369_vm4, %v368_v14, 0.0 }
  0x90   : > { %1023 = vrot.lane.b32.xlu1 %v3803_v54, %s3598_s9  ;;  %1316 = vrot.lane.b32.xlu0 %v3850_v10, %s3593_s28  ;;  %v427_v20 = vrot.slane %v394_v16, 4  ;;  %v375_v30 = vmul.f32 %v373_v19, %v3839_v2 }
  0x92   : > { %v366_v22 = vpop.permute.xlu1 %365  ;;  %v396_v23 = vpop.permute.xlu0 %395  ;;  %v438_v35 = vsel %vm430_vm1, %v386_v28, %v427_v20  ;;  %v422_v42 = vrot.slane %v375_v30, 4 }
  0x93   : > { %v370_v24 = vsel %vm369_vm4, %v366_v22, %v368_v14  ;;  %v400_v25 = vsel %vm399_vm0, %v396_v23, %v398_v7 }
  0x94   : > { %v404_v31 = vmul.f32 %v400_v25, %v3864_v3  ;;  %1033 = vrot.lane.b32.xlu1 %v3803_v54, %s3599_s10  ;;  %1025 = vrot.lane.b32.xlu0 %v3788_v52, %s3598_s9  ;;  %v374_v32 = vmul.f32 %v370_v24, %v3864_v3  ;;  %v436_v56 = vsel %vm430_vm1, %v3666_v15, %v422_v42 }
  0x95   : > { %v3911_v15 = vrot.slane %v1445_v55, %v3657_v5 }
  0x96   : > { %v388_v33 = vpop.permute.xlu1 %387  ;;  %3435 = vmatpush1.msk.msra.mxu0 %vm430_vm1, %v404_v31  ;;  %v377_v34 = vpop.permute.xlu0 %376  ;;  %v421_v48 = vrot.slane %v374_v32, 4 }
  0x97   : > { %v392_v36 = vsel %vm391_vm2, %v388_v33, %v390_v13  ;;  %v381_v37 = vsel %vm380_vm3, %v377_v34, %v379_v6  ;;  %478 = vmatprep.subr.mxu0 %v438_v35  ;;  %v1460_v6 = vrot.slane %v1446_v58, %v3657_v5 }
  0x98   : > { %v426_v43 = vrot.slane %v392_v36, 4  ;;  %v385_v44 = vmul.f32 %v381_v37, %v3870_v26  ;;  %1289 = vrot.lane.b32.xlu1 %v3850_v10, %s3595_s30  ;;  %1035 = vrot.lane.b32.xlu0 %v3788_v52, %s3599_s10  ;;  %v435_v60 = vsel %vm430_vm1, %v3681_v21, %v421_v48 }
  0x99   : > { %v1462_v18 = vcombine.high %v3911_v15, %v1460_v6 }
  0x9a   : > { %v357_v50 = vpop.permute.xlu1 %356  ;;  %v355_v51 = vpop.permute.xlu0 %354  ;;  %v437_v53 = vsel %vm430_vm1, %v385_v44, %v426_v43 }
  0x9b   : > { %479 = vmatpush1.msra.mxu0 %v437_v53  ;;  %v359_v59 = vsel %vm358_vm5, %v355_v51, %v357_v50  ;;  %v362_v63 = vsel %vm358_vm5, 0.0, %v355_v51  ;;  %v3940_v30 = vrot.slane %v1462_v18, %v3657_v5  ;;  %v1461_v53 = vcombine.low %v3911_v15, %v1460_v6 }
  0x9c   : > { %1309 = vrot.lane.b32.xlu1 %v3850_v10, %s3594_s29  ;;  %1299 = vrot.lane.b32.xlu0 %v3850_v10, %s3592_s27  ;;  %v364_v4 = vmul.f32 %v359_v59, %v3858_v17  ;;  %v363_v8 = vmul.f32 %v362_v63, %v3870_v26 }
  0x9d   : > { %480 = vmatprep.subr.mxu0 %v436_v56 }
  0x9e   : > { %481 = vmatpush1.msra.mxu0 %v435_v60  ;;  %v333_v61 = vpop.permute.xlu1 %332  ;;  %v636_v62 = vpop.permute.xlu0 %635  ;;  %v414_v13 = vrot.slane %v364_v4, 4  ;;  %v413_v19 = vrot.slane %v363_v8, 4 }
  0x9f   : > { %v640_v1 = vsel %vm399_vm0, %v636_v62, 0.0  ;;  %v340_v7 = vsel %vm336_vm6, 0.0, %v333_v61 }
  0xa0   : > { %1287 = vrot.lane.b32.xlu1 %v3903_v57, %s3595_s30  ;;  %1314 = vrot.lane.b32.xlu0 %v3903_v57, %s3593_s28  ;;  %v642_v21 = vmul.f32 %v640_v1, %v3839_v2  ;;  %v352_v14 = vmul.f32 %v3864_v3, %v340_v7 }
  0xa2   : > { %v609_v9 = vpop.permute.xlu1 %608  ;;  %3441 = vmatprep.subr.msk.mxu1 %vm430_vm1, %v642_v21  ;;  %v335_v11 = vpop.permute.xlu0 %334  ;;  %v433_v28 = vsel %vm430_vm1, %v352_v14, %v413_v19  ;;  %v3472_v14 = vld [vmem:[%s3654_s26 + $0x6] ss:$8 sm:$0x3]  ;;  %v3473_v19 = vld [vmem:[%s3654_s26 + $0x16] ss:$8 sm:$0x3] }
  0xa3   : > { %v337_v12 = vsel %vm336_vm6, %v333_v61, %v335_v11  ;;  %v613_v31 = vsel %vm369_vm4, %v609_v9, 0.0  ;;  %v3971_v61 = vrot.slane %v1461_v53, %v3657_v5 }
  0xa4   : > { %v353_v16 = vmul.f32 %v3839_v2, %v337_v12  ;;  %1307 = vrot.lane.b32.xlu1 %v3903_v57, %s3594_s29  ;;  %1297 = vrot.lane.b32.xlu0 %v3903_v57, %s3592_s27  ;;  %v615_v38 = vmul.f32 %v613_v31, %v3839_v2 }
  0xa6   : > { %v629_v20 = vpop.permute.xlu1 %628  ;;  %v619_v22 = vpop.permute.xlu0 %618  ;;  %v434_v23 = vsel %vm430_vm1, %v353_v16, %v414_v13  ;;  %v659_v49 = vrot.slane %v615_v38, 4 }
  0xa7   : > { %v632_v24 = vsel %vm391_vm2, %v629_v20, 0.0  ;;  %v623_v25 = vsel %vm380_vm3, %v619_v22, 0.0  ;;  %482 = vmatprep.subr.mxu0 %v434_v23 }
  0xa8   : > { %1279 = vrot.lane.b32.xlu1 %v3850_v10, %s3596_s7  ;;  %1277 = vrot.lane.b32.xlu0 %v3903_v57, %s3596_s7  ;;  %v664_v32 = vrot.slane %v632_v24, 4  ;;  %v625_v33 = vmul.f32 %v623_v25, %v3858_v17  ;;  %v672_v60 = vsel %vm430_vm1, %v3698_v27, %v659_v49  ;;  %v3474_v24 = vld [vmem:[%s3654_s26 + $0x26] ss:$8 sm:$0x3] }
  0xa9   : > { %483 = vmatpush1.msra.mxu0 %v433_v28  ;;  %v3475_v25 = vld [vmem:[%s3654_s26 + $0x36] ss:$8 sm:$0x3] }
  0xaa   : > { %v607_v34 = vpop.permute.xlu1 %606  ;;  %v634_v35 = vpop.permute.xlu0 %633  ;;  %v674_v45 = vsel %vm430_vm1, %v625_v33, %v664_v32 }
  0xab   : > { %v610_v36 = vsel %vm369_vm4, %v607_v34, %v609_v9  ;;  %v637_v37 = vsel %vm399_vm0, %v634_v35, %v636_v62  ;;  %v1672_v34 = vcombine.low %v3472_v14, %v3473_v19  ;;  %v1673_v35 = vcombine.low %v3474_v24, %v3475_v25 }
  0xac   : > { %v641_v41 = vmul.f32 %v637_v37, %v3864_v3  ;;  %1267 = vrot.lane.b32.xlu1 %v3903_v57, %s3597_s8  ;;  %1543 = vrot.lane.b32.xlu0 %v3940_v30, %s3593_s28  ;;  %v614_v42 = vmul.f32 %v610_v36, %v3864_v3 }
  0xad   : > { %v4024_v49 = vrot.slane %v1672_v34, %v3657_v5 }
  0xae   : > { %v627_v43 = vpop.permute.xlu1 %626  ;;  %3442 = vmatpush1.msk.msra.mxu1 %vm430_vm1, %v641_v41  ;;  %v617_v44 = vpop.permute.xlu0 %616  ;;  %v658_v55 = vrot.slane %v614_v42, 4 }
  0xaf   : > { %v630_v47 = vsel %vm391_vm2, %v627_v43, %v629_v20  ;;  %v620_v48 = vsel %vm380_vm3, %v617_v44, %v619_v22  ;;  %705 = vmatprep.subr.mxu1 %v674_v45  ;;  %v3994_v20 = vld [vmem:[%s4730_s1] sm:$0xff] }
  0xb0   : > { %v663_v50 = vrot.slane %v630_v47, 4  ;;  %v624_v51 = vmul.f32 %v620_v48, %v3870_v26  ;;  %1516 = vrot.lane.b32.xlu1 %v3940_v30, %s3595_s30  ;;  %1269 = vrot.lane.b32.xlu0 %v3850_v10, %s3597_s8  ;;  %v671_v1 = vsel %vm430_vm1, %v3713_v29, %v658_v55 }
  0xb2   : > { %v305_v56 = vpop.permute.xlu1 %304  ;;  %v303_v58 = vpop.permute.xlu0 %302  ;;  %v673_v59 = vsel %vm430_vm1, %v624_v51, %v663_v50  ;;  %v4027_v50 = vrot.slane %v1673_v35, %v3657_v5  ;;  %v3479_v35 = vld [vmem:[%s3654_s26 + $0x7] ss:$8 sm:$0x3] }
  0xb3   : > { %706 = vmatpush1.msra.mxu1 %v673_v59  ;;  %v307_v62 = vsel %vm306_vm7, %v303_v58, %v305_v56  ;;  %v310_v63 = vsel %vm306_vm7, 0.0, %v303_v58 }
  0xb4   : > { %1536 = vrot.lane.b32.xlu1 %v3940_v30, %s3594_s29  ;;  %1526 = vrot.lane.b32.xlu0 %v3940_v30, %s3592_s27  ;;  %v322_v6 = vmul.f32 %v3870_v26, %v310_v63  ;;  %v323_v7 = vmul.f32 %v3858_v17, %v307_v62  ;;  %v1689_v55 = vcombine.high %v4024_v49, %v4027_v50 }
  0xb5   : > { %707 = vmatprep.subr.mxu1 %v672_v60 }
  0xb6   : > { %708 = vmatpush1.msra.mxu1 %v671_v1  ;;  %v327_v15 = vpop.permute.xlu1 %326  ;;  %v325_v4 = vpop.permute.xlu0 %324 }
  0xb7   : > { %v329_v21 = vsel %vm328_vm8, %v325_v4, %v327_v15  ;;  %v331_v27 = vsel %vm328_vm8, 0.0, %v325_v4 }
  0xb8   : > { %v407_v8 = vrot.slane %v331_v27, 4  ;;  %v408_v9 = vrot.slane %v329_v21, 4  ;;  %1514 = vrot.lane.b32.xlu1 %v3971_v61, %s3595_s30  ;;  %1541 = vrot.lane.b32.xlu0 %v3971_v61, %s3593_s28  ;;  %v4046_v21 = vrot.slane %v1689_v55, %v3657_v5 }
  0xba   : > { %v599_v29 = vpop.permute.xlu1 %598  ;;  %v597_v11 = vpop.permute.xlu0 %596  ;;  %v432_v12 = vsel %vm430_vm1, %v323_v7, %v408_v9  ;;  %v431_v13 = vsel %vm430_vm1, %v322_v6, %v407_v8 }
  0xbb   : > { %v600_v16 = vsel %vm358_vm5, %v597_v11, %v599_v29  ;;  %v603_v18 = vsel %vm358_vm5, 0.0, %v597_v11  ;;  %484 = vmatprep.subr.mxu0 %v432_v12 }
  0xbc   : > { %v604_v22 = vmul.f32 %v603_v18, %v3870_v26  ;;  %v605_v23 = vmul.f32 %v600_v16, %v3858_v17  ;;  %1534 = vrot.lane.b32.xlu1 %v3971_v61, %s3594_s29  ;;  %1524 = vrot.lane.b32.xlu0 %v3971_v61, %s3592_s27 }
  0xbd   : > { %485 = vmatpush1.msra.mxu0 %v431_v13 }
  0xbe   : > { %v589_v28 = vpop.permute.xlu1 %588  ;;  %v587_v31 = vpop.permute.xlu0 %586  ;;  %3436 = vmatmul.mubr.msk.f32.vlgmr.msra.gmra.mxu0 %vm444_vm9, %v3994_v20  ;;  %v650_v36 = vrot.slane %v604_v22, 4  ;;  %v651_v37 = vrot.slane %v605_v23, 4 }
  0xbf   : > { %v590_v32 = vsel %vm336_vm6, %v587_v31, %v589_v28  ;;  %v593_v33 = vsel %vm336_vm6, 0.0, %v587_v31  ;;  %972 = vmatprep.mubr.f32.mxu0 %v3600_v40 }
  0xc0   : > { %v594_v38 = vmul.f32 %v593_v33, %v3864_v3  ;;  %v595_v41 = vmul.f32 %v590_v32, %v3839_v2  ;;  %1252 = vrot.lane.b32.xlu1 %v3850_v10, %s3598_s9  ;;  %1250 = vrot.lane.b32.xlu0 %v3903_v57, %s3598_s9 }
  0xc2   : > { %v570_v42 = vpop.permute.xlu1 %569  ;;  %v863_v43 = vpop.permute.xlu0 %862  ;;  %v670_v44 = vsel %vm430_vm1, %v595_v41, %v651_v37  ;;  %v669_v45 = vsel %vm430_vm1, %v594_v38, %v650_v36  ;;  %v3480_v36 = vld [vmem:[%s3654_s26 + $0x17] ss:$8 sm:$0x3] }
  0xc3   : > { %v867_v47 = vsel %vm399_vm0, %v863_v43, 0.0  ;;  %709 = vmatprep.subr.mxu1 %v670_v44  ;;  %v576_v62 = vsel %vm306_vm7, 0.0, %v570_v42 }
  0xc4   : > { %v869_v48 = vmul.f32 %v867_v47, %v3839_v2  ;;  %1262 = vrot.lane.b32.xlu1 %v3850_v10, %s3599_s10  ;;  %1260 = vrot.lane.b32.xlu0 %v3903_v57, %s3599_s10  ;;  %v577_v27 = vmul.f32 %v576_v62, %v3870_v26 }
  0xc5   : > { %710 = vmatpush1.msra.mxu1 %v669_v45  ;;  %v3482_v45 = vld [vmem:[%s3654_s26 + $0x37] ss:$8 sm:$0x3] }
  0xc6   : > { %v580_v51 = vpop.permute.xlu1 %579  ;;  %3448 = vmatprep.subr.msk.mxu0 %vm430_vm1, %v869_v48  ;;  %v572_v53 = vpop.permute.xlu0 %571 }
  0xc7   : > { %v585_v56 = vsel %vm328_vm8, 0.0, %v580_v51  ;;  %v573_v58 = vsel %vm306_vm7, %v570_v42, %v572_v53  ;;  %v1688_v42 = vcombine.low %v4024_v49, %v4027_v50  ;;  %v1899_v53 = vcombine.low %v3479_v35, %v3480_v36 }
  0xc8   : > { %1506 = vrot.lane.b32.xlu1 %v3940_v30, %s3596_s7  ;;  %1504 = vrot.lane.b32.xlu0 %v3971_v61, %s3596_s7  ;;  %v644_v1 = vrot.slane %v585_v56, 4  ;;  %v578_v15 = vmul.f32 %v573_v58, %v3858_v17 }
  0xc9   : > { %v4094_v49 = vrot.slane %v1688_v42, %v3657_v5 }
  0xca   : > { %v836_v59 = vpop.permute.xlu1 %835  ;;  %v582_v60 = vpop.permute.xlu0 %581  ;;  %v667_v11 = vsel %vm430_vm1, %v577_v27, %v644_v1  ;;  %v4102_v1 = vrot.slane %v1899_v53, %v3657_v5 }
  0xcb   : > { %v583_v63 = vsel %vm328_vm8, %v580_v51, %v582_v60  ;;  %v840_v12 = vsel %vm369_vm4, %v836_v59, 0.0 }
  0xcc   : > { %v645_v4 = vrot.slane %v583_v63, 4  ;;  %1496 = vrot.lane.b32.xlu1 %v3940_v30, %s3597_s8  ;;  %1494 = vrot.lane.b32.xlu0 %v3971_v61, %s3597_s8  ;;  %v842_v23 = vmul.f32 %v840_v12, %v3839_v2 }
  0xce   : > { %v856_v6 = vpop.permute.xlu1 %855  ;;  %v846_v7 = vpop.permute.xlu0 %845  ;;  %v668_v8 = vsel %vm430_vm1, %v578_v15, %v645_v4  ;;  %v886_v37 = vrot.slane %v842_v23, 4 }
  0xcf   : > { %v859_v9 = vsel %vm391_vm2, %v856_v6, 0.0  ;;  %v850_v29 = vsel %vm380_vm3, %v846_v7, 0.0  ;;  %711 = vmatprep.subr.mxu1 %v668_v8 }
  0xd0   : > { %1477 = vrot.lane.b32.xlu1 %v3971_v61, %s3598_s9  ;;  %1770 = vrot.lane.b32.xlu0 %v4046_v21, %s3593_s28  ;;  %v891_v13 = vrot.slane %v859_v9, 4  ;;  %v852_v14 = vmul.f32 %v850_v29, %v3858_v17  ;;  %v899_v55 = vsel %vm430_vm1, %v3746_v39, %v886_v37 }
  0xd1   : > { %712 = vmatpush1.msra.mxu1 %v667_v11 }
  0xd2   : > { %v834_v16 = vpop.permute.xlu1 %833  ;;  %v861_v18 = vpop.permute.xlu0 %860  ;;  %3443 = vmatmul.mubr.msk.f32.vlgmr.msra.gmra.mxu1 %vm444_vm9, %v3994_v20  ;;  %v901_v32 = vsel %vm430_vm1, %v852_v14, %v891_v13 }
  0xd3   : > { %v837_v19 = vsel %vm369_vm4, %v834_v16, %v836_v59  ;;  %v864_v22 = vsel %vm399_vm0, %v861_v18, %v863_v43  ;;  %1199 = vmatprep.mubr.f32.mxu1 %v3600_v40  ;;  %v3481_v43 = vld [vmem:[%s3654_s26 + $0x27] ss:$8 sm:$0x3] }
  0xd4   : > { %v868_v24 = vmul.f32 %v864_v22, %v3864_v3  ;;  %1487 = vrot.lane.b32.xlu1 %v3971_v61, %s3599_s10  ;;  %1479 = vrot.lane.b32.xlu0 %v3940_v30, %s3598_s9  ;;  %v841_v25 = vmul.f32 %v837_v19, %v3864_v3  ;;  %v1900_v50 = vcombine.low %v3481_v43, %v3482_v45 }
  0xd6   : > { %v854_v28 = vpop.permute.xlu1 %853  ;;  %3449 = vmatpush1.msk.msra.mxu0 %vm430_vm1, %v868_v24  ;;  %v844_v31 = vpop.permute.xlu0 %843  ;;  %v885_v44 = vrot.slane %v841_v25, 4 }
  0xd7   : > { %v857_v33 = vsel %vm391_vm2, %v854_v28, %v856_v6  ;;  %v847_v34 = vsel %vm380_vm3, %v844_v31, %v846_v7  ;;  %932 = vmatprep.subr.mxu0 %v901_v32 }
  0xd8   : > { %v890_v38 = vrot.slane %v857_v33, 4  ;;  %v851_v41 = vmul.f32 %v847_v34, %v3870_v26  ;;  %1743 = vrot.lane.b32.xlu1 %v4046_v21, %s3595_s30  ;;  %1489 = vrot.lane.b32.xlu0 %v3940_v30, %s3599_s10  ;;  %v898_v58 = vsel %vm430_vm1, %v3771_v46, %v885_v44  ;;  %v1914_v46 = vrot.slane %v1900_v50, %v3657_v5 }
  0xda   : > { %v826_v47 = vpop.permute.xlu1 %825  ;;  %v824_v48 = vpop.permute.xlu0 %823  ;;  %v900_v51 = vsel %vm430_vm1, %v851_v41, %v890_v38  ;;  %v1916_v12 = vcombine.high %v4102_v1, %v1914_v46  ;;  %v1915_v53 = vcombine.low %v4102_v1, %v1914_v46 }
  0xdb   : > { %933 = vmatpush1.msra.mxu0 %v900_v51  ;;  %v827_v56 = vsel %vm358_vm5, %v824_v48, %v826_v47  ;;  %v830_v62 = vsel %vm358_vm5, 0.0, %v824_v48 }
  0xdc   : > { %1763 = vrot.lane.b32.xlu1 %v4046_v21, %s3594_s29  ;;  %1753 = vrot.lane.b32.xlu0 %v4046_v21, %s3592_s27  ;;  %v832_v39 = vmul.f32 %v827_v56, %v3858_v17  ;;  %v831_v27 = vmul.f32 %v830_v62, %v3870_v26  ;;  %v4131_v24 = vrot.slane %v1916_v12, %v3657_v5 }
  0xdd   : > { %934 = vmatprep.subr.mxu0 %v899_v55 }
  0xde   : > { %935 = vmatpush1.msra.mxu0 %v898_v58  ;;  %v814_v59 = vpop.permute.xlu1 %813  ;;  %v1090_v60 = vpop.permute.xlu0 %1089  ;;  %v878_v9 = vrot.slane %v832_v39, 4  ;;  %v877_v13 = vrot.slane %v831_v27, 4 }
  0xdf   : > { %v1094_v63 = vsel %vm399_vm0, %v1090_v60, 0.0  ;;  %v820_v4 = vsel %vm336_vm6, 0.0, %v814_v59 }
  0xe0   : > { %v1096_v15 = vmul.f32 %v1094_v63, %v3839_v2  ;;  %1741 = vrot.lane.b32.xlu1 %v4094_v49, %s3595_s30  ;;  %1768 = vrot.lane.b32.xlu0 %v4094_v49, %s3593_s28  ;;  %v821_v29 = vmul.f32 %v820_v4, %v3864_v3 }
  0xe2   : > { %v1063_v6 = vpop.permute.xlu1 %1062  ;;  %3455 = vmatprep.subr.msk.mxu1 %vm430_vm1, %v1096_v15  ;;  %v816_v7 = vpop.permute.xlu0 %815  ;;  %v896_v23 = vsel %vm430_vm1, %v821_v29, %v877_v13 }
  0xe3   : > { %v817_v8 = vsel %vm336_vm6, %v814_v59, %v816_v7  ;;  %v1067_v25 = vsel %vm369_vm4, %v1063_v6, 0.0 }
  0xe4   : > { %v822_v11 = vmul.f32 %v817_v8, %v3839_v2  ;;  %1761 = vrot.lane.b32.xlu1 %v4094_v49, %s3594_s29  ;;  %1751 = vrot.lane.b32.xlu0 %v4094_v49, %s3592_s27  ;;  %v1069_v36 = vmul.f32 %v1067_v25, %v3839_v2 }
  0xe6   : > { %v1083_v14 = vpop.permute.xlu1 %1082  ;;  %v1073_v16 = vpop.permute.xlu0 %1072  ;;  %v897_v18 = vsel %vm430_vm1, %v822_v11, %v878_v9  ;;  %v1113_v47 = vrot.slane %v1069_v36, 4 }
  0xe7   : > { %v1086_v19 = vsel %vm391_vm2, %v1083_v14, 0.0  ;;  %v1077_v22 = vsel %vm380_vm3, %v1073_v16, 0.0  ;;  %936 = vmatprep.subr.mxu0 %v897_v18 }
  0xe8   : > { %1733 = vrot.lane.b32.xlu1 %v4046_v21, %s3596_s7  ;;  %1731 = vrot.lane.b32.xlu0 %v4094_v49, %s3596_s7  ;;  %v1118_v28 = vrot.slane %v1086_v19, 4  ;;  %v1079_v31 = vmul.f32 %v1077_v22, %v3858_v17  ;;  %v1126_v59 = vsel %vm430_vm1, %v3788_v52, %v1113_v47 }
  0xe9   : > { %937 = vmatpush1.msra.mxu0 %v896_v23 }
  0xea   : > { %v1061_v32 = vpop.permute.xlu1 %1060  ;;  %v1088_v33 = vpop.permute.xlu0 %1087  ;;  %v1128_v43 = vsel %vm430_vm1, %v1079_v31, %v1118_v28 }
  0xeb   : > { %v1064_v34 = vsel %vm369_vm4, %v1061_v32, %v1063_v6  ;;  %v1091_v35 = vsel %vm399_vm0, %v1088_v33, %v1090_v60  ;;  %v4162_v60 = vrot.slane %v1915_v53, %v3657_v5 }
  0xec   : > { %v1095_v37 = vmul.f32 %v1091_v35, %v3864_v3  ;;  %1721 = vrot.lane.b32.xlu1 %v4094_v49, %s3597_s8  ;;  %1997 = vrot.lane.b32.xlu0 %v4131_v24, %s3593_s28  ;;  %v1068_v38 = vmul.f32 %v1064_v34, %v3864_v3 }
  0xee   : > { %v1081_v41 = vpop.permute.xlu1 %1080  ;;  %3456 = vmatpush1.msk.msra.mxu1 %vm430_vm1, %v1095_v37  ;;  %v1071_v42 = vpop.permute.xlu0 %1070  ;;  %v1112_v55 = vrot.slane %v1068_v38, 4 }
  0xef   : > { %v1084_v44 = vsel %vm391_vm2, %v1081_v41, %v1083_v14  ;;  %v1074_v45 = vsel %vm380_vm3, %v1071_v42, %v1073_v16  ;;  %1159 = vmatprep.subr.mxu1 %v1128_v43 }
  0xf0   : > { %v1117_v48 = vrot.slane %v1084_v44, 4  ;;  %v1078_v51 = vmul.f32 %v1074_v45, %v3870_v26  ;;  %1970 = vrot.lane.b32.xlu1 %v4131_v24, %s3595_s30  ;;  %1723 = vrot.lane.b32.xlu0 %v4046_v21, %s3597_s8  ;;  %v1125_v1 = vsel %vm430_vm1, %v3803_v54, %v1112_v55 }
  0xf2   : > { %v799_v50 = vpop.permute.xlu1 %798  ;;  %v797_v56 = vpop.permute.xlu0 %796  ;;  %v1127_v58 = vsel %vm430_vm1, %v1078_v51, %v1117_v48 }
  0xf3   : > { %1160 = vmatpush1.msra.mxu1 %v1127_v58  ;;  %v800_v62 = vsel %vm306_vm7, %v797_v56, %v799_v50  ;;  %v803_v63 = vsel %vm306_vm7, 0.0, %v797_v56 }
  0xf4   : > { %1990 = vrot.lane.b32.xlu1 %v4131_v24, %s3594_s29  ;;  %1980 = vrot.lane.b32.xlu0 %v4131_v24, %s3592_s27  ;;  %v804_v52 = vmul.f32 %v803_v63, %v3870_v26  ;;  %v805_v27 = vmul.f32 %v800_v62, %v3858_v17  ;;  %v3601_v62 = vmov 0  }
  0xf5   : > { %1161 = vmatprep.subr.mxu1 %v1126_v59  ;;  %3580 = vset.pattern.permute.xlu0 %v3601_v62 }
  0xf6   : > { %1162 = vmatpush1.msra.mxu1 %v1125_v1  ;;  %v809_v39 = vpop.permute.xlu1 %808  ;;  %v807_v15 = vpop.permute.xlu0 %806  ;;  %3581 = vset.pattern.permute.xlu1 %v3601_v62 }
  0xf7   : > { %v810_v46 = vsel %vm328_vm8, %v807_v15, %v809_v39  ;;  %v812_v4 = vsel %vm328_vm8, 0.0, %v807_v15 }
  0xf8   : > { %v871_v6 = vrot.slane %v812_v4, 4  ;;  %v872_v7 = vrot.slane %v810_v46, 4  ;;  %1968 = vrot.lane.b32.xlu1 %v4162_v60, %s3595_s30  ;;  %1995 = vrot.lane.b32.xlu0 %v4162_v60, %s3593_s28 }
  0xfa   : > { %v1053_v54 = vpop.permute.xlu1 %1052  ;;  %v1051_v8 = vpop.permute.xlu0 %1050  ;;  %v895_v9 = vsel %vm430_vm1, %v805_v27, %v872_v7  ;;  %v894_v29 = vsel %vm430_vm1, %v804_v52, %v871_v6 }
  0xfb   : > { %v1054_v11 = vsel %vm358_vm5, %v1051_v8, %v1053_v54  ;;  %v1057_v12 = vsel %vm358_vm5, 0.0, %v1051_v8  ;;  %938 = vmatprep.subr.mxu0 %v895_v9 }
  0xfc   : > { %v1058_v13 = vmul.f32 %v1057_v12, %v3870_v26  ;;  %v1059_v14 = vmul.f32 %v1054_v11, %v3858_v17  ;;  %1988 = vrot.lane.b32.xlu1 %v4162_v60, %s3594_s29  ;;  %1978 = vrot.lane.b32.xlu0 %v4162_v60, %s3592_s27  ;;  %s3560_s27 = sshll.u32 %s4739_s22, 7 }
  0xfd   : > { %939 = vmatpush1.msra.mxu0 %v894_v29  ;;  %v254_v29 = vld [vmem:[%s4731_s2] sm:$0xff]  ;;  %s4467_s30 = scalar_lea.vmem %s4735_s6, %s3560_s27 }
  0xfe   : > { %v1043_v16 = vpop.permute.xlu1 %1042  ;;  %v1041_v18 = vpop.permute.xlu0 %1040  ;;  %3450 = vmatmul.mubr.msk.f32.vlgmr.msra.gmra.mxu0 %vm444_vm9, %v3994_v20  ;;  %v1104_v23 = vrot.slane %v1058_v13, 4  ;;  %v1105_v25 = vrot.slane %v1059_v14, 4 }
  0xff   : > { %v1044_v19 = vsel %vm336_vm6, %v1041_v18, %v1043_v16  ;;  %v1047_v22 = vsel %vm336_vm6, 0.0, %v1041_v18  ;;  %1426 = vmatprep.mubr.f32.mxu0 %v3600_v40 }
 0x100   : > { %v1048_v28 = vmul.f32 %v1047_v22, %v3864_v3  ;;  %v1049_v31 = vmul.f32 %v1044_v19, %v3839_v2  ;;  %1706 = vrot.lane.b32.xlu1 %v4046_v21, %s3598_s9  ;;  %1704 = vrot.lane.b32.xlu0 %v4094_v49, %s3598_s9 }
 0x102   : > { %v1024_v32 = vpop.permute.xlu1 %1023  ;;  %v1317_v33 = vpop.permute.xlu0 %1316  ;;  %v1124_v34 = vsel %vm430_vm1, %v1049_v31, %v1105_v25  ;;  %v1123_v35 = vsel %vm430_vm1, %v1048_v28, %v1104_v23 }
 0x103   : > { %v1321_v36 = vsel %vm399_vm0, %v1317_v33, 0.0  ;;  %1163 = vmatprep.subr.mxu1 %v1124_v34  ;;  %v1030_v47 = vsel %vm306_vm7, 0.0, %v1024_v32 }
 0x104   : > { %v1323_v37 = vmul.f32 %v1321_v36, %v3839_v2  ;;  %1716 = vrot.lane.b32.xlu1 %v4046_v21, %s3599_s10  ;;  %1714 = vrot.lane.b32.xlu0 %v4094_v49, %s3599_s10  ;;  %v1031_v50 = vmul.f32 %v1030_v47, %v3870_v26 }
 0x105   : > { %1164 = vmatpush1.msra.mxu1 %v1123_v35 }
 0x106   : > { %v1034_v38 = vpop.permute.xlu1 %1033  ;;  %3462 = vmatprep.subr.msk.mxu0 %vm430_vm1, %v1323_v37  ;;  %v1026_v41 = vpop.permute.xlu0 %1025 }
 0x107   : > { %v1039_v42 = vsel %vm328_vm8, 0.0, %v1034_v38  ;;  %v1027_v43 = vsel %vm306_vm7, %v1024_v32, %v1026_v41 }
 0x108   : > { %1960 = vrot.lane.b32.xlu1 %v4131_v24, %s3596_s7  ;;  %1958 = vrot.lane.b32.xlu0 %v4162_v60, %s3596_s7  ;;  %v1098_v51 = vrot.slane %v1039_v42, 4  ;;  %v1032_v53 = vmul.f32 %v1027_v43, %v3858_v17 }
 0x10a   : > { %v1290_v44 = vpop.permute.xlu1 %1289  ;;  %v1036_v45 = vpop.permute.xlu0 %1035  ;;  %v1121_v15 = vsel %vm430_vm1, %v1031_v50, %v1098_v51 }
 0x10b   : > { %v1037_v48 = vsel %vm328_vm8, %v1034_v38, %v1036_v45  ;;  %v1294_v39 = vsel %vm369_vm4, %v1290_v44, 0.0 }
 0x10c   : > { %v1099_v55 = vrot.slane %v1037_v48, 4  ;;  %1950 = vrot.lane.b32.xlu1 %v4131_v24, %s3597_s8  ;;  %1948 = vrot.lane.b32.xlu0 %v4162_v60, %s3597_s8  ;;  %v1296_v6 = vmul.f32 %v1294_v39, %v3839_v2 }
 0x10e   : > { %v1310_v56 = vpop.permute.xlu1 %1309  ;;  %v1300_v58 = vpop.permute.xlu0 %1299  ;;  %v1122_v59 = vsel %vm430_vm1, %v1032_v53, %v1099_v55  ;;  %v1340_v14 = vrot.slane %v1296_v6, 4 }
 0x10f   : > { %v1313_v63 = vsel %vm391_vm2, %v1310_v56, 0.0  ;;  %v1304_v1 = vsel %vm380_vm3, %v1300_v58, 0.0  ;;  %1165 = vmatprep.subr.mxu1 %v1122_v59 }
 0x110   : > { %1933 = vrot.lane.b32.xlu1 %v4131_v24, %s3598_s9  ;;  %1931 = vrot.lane.b32.xlu0 %v4162_v60, %s3598_s9  ;;  %v1345_v46 = vrot.slane %v1313_v63, 4  ;;  %v1306_v4 = vmul.f32 %v1304_v1, %v3858_v17  ;;  %v1353_v32 = vsel %vm430_vm1, %v3850_v10, %v1340_v14 }
 0x111   : > { %1166 = vmatpush1.msra.mxu1 %v1121_v15 }
 0x112   : > { %v1288_v52 = vpop.permute.xlu1 %1287  ;;  %v1315_v27 = vpop.permute.xlu0 %1314  ;;  %3457 = vmatmul.mubr.msk.f32.vlgmr.msra.gmra.mxu1 %vm444_vm9, %v3994_v20  ;;  %v1355_v13 = vsel %vm430_vm1, %v1306_v4, %v1345_v46 }
 0x113   : > { %v1291_v7 = vsel %vm369_vm4, %v1288_v52, %v1290_v44  ;;  %v1318_v54 = vsel %vm399_vm0, %v1315_v27, %v1317_v33  ;;  %1653 = vmatprep.mubr.f32.mxu1 %v3600_v40 }
 0x114   : > { %v1295_v8 = vmul.f32 %v1291_v7, %v3864_v3  ;;  %v1322_v9 = vmul.f32 %v1318_v54, %v3864_v3  ;;  %1943 = vrot.lane.b32.xlu1 %v4131_v24, %s3599_s10  ;;  %1941 = vrot.lane.b32.xlu0 %v4162_v60, %s3599_s10 }
 0x116   : > { %v1308_v11 = vpop.permute.xlu1 %1307  ;;  %3463 = vmatpush1.msk.msra.mxu0 %vm430_vm1, %v1322_v9  ;;  %v1298_v12 = vpop.permute.xlu0 %1297  ;;  %v1339_v19 = vrot.slane %v1295_v8, 4 }
 0x117   : > { %v1311_v16 = vsel %vm391_vm2, %v1308_v11, %v1310_v56  ;;  %v1301_v18 = vsel %vm380_vm3, %v1298_v12, %v1300_v58  ;;  %1386 = vmatprep.subr.mxu0 %v1355_v13 }
 0x118   : > { %v1344_v22 = vrot.slane %v1311_v16, 4  ;;  %v1305_v23 = vmul.f32 %v1301_v18, %v3870_v26  ;;  %441 = vperm.xlu0 %3580, %v254_v29   ;;  %v1352_v33 = vsel %vm430_vm1, %v3903_v57, %v1339_v19 }
 0x11a   : > { %v1280_v25 = vpop.permute.xlu1 %1279  ;;  %v1278_v28 = vpop.permute.xlu0 %1277  ;;  %v1354_v31 = vsel %vm430_vm1, %v1305_v23, %v1344_v22 }
 0x11b   : > { %1387 = vmatpush1.msra.mxu0 %v1354_v31  ;;  %v1281_v34 = vsel %vm358_vm5, %v1278_v28, %v1280_v25  ;;  %v1284_v35 = vsel %vm358_vm5, 0.0, %v1278_v28 }
 0x11c   : > { %1388 = vmatprep.subr.mxu0 %v1353_v32  ;;  %v1286_v41 = vmul.f32 %v1281_v34, %v3858_v17  ;;  %v1285_v10 = vmul.f32 %v1284_v35, %v3870_v26 }
 0x11d   : > { %1389 = vmatpush1.msra.mxu0 %v1352_v33 }
 0x11e   : > { %v1268_v36 = vpop.permute.xlu1 %1267  ;;  %v1544_v37 = vpop.permute.xlu0 %1543  ;;  %v1332_v48 = vrot.slane %v1286_v41, 4  ;;  %v1331_v53 = vrot.slane %v1285_v10, 4 }
 0x11f   : > { %v1548_v38 = vsel %vm399_vm0, %v1544_v37, 0.0  ;;  %v1274_v42 = vsel %vm336_vm6, 0.0, %v1268_v36 }
 0x120   : > { %v1550_v43 = vmul.f32 %v1548_v38, %v3839_v2  ;;  %v1275_v45 = vmul.f32 %v1274_v42, %v3864_v3 }
 0x122   : > { %v1517_v44 = vpop.permute.xlu1 %1516  ;;  %3469 = vmatprep.subr.msk.mxu1 %vm430_vm1, %v1550_v43  ;;  %v1270_v57 = vpop.permute.xlu0 %1269  ;;  %v1350_v62 = vsel %vm430_vm1, %v1275_v45, %v1331_v53 }
 0x123   : > { %v1271_v47 = vsel %vm336_vm6, %v1268_v36, %v1270_v57  ;;  %v1521_v63 = vsel %vm369_vm4, %v1517_v44, 0.0 }
 0x124   : > { %v1276_v51 = vmul.f32 %v1271_v47, %v3839_v2  ;;  %v1523_v4 = vmul.f32 %v1521_v63, %v3839_v2 }
 0x126   : > { %v1537_v55 = vpop.permute.xlu1 %1536  ;;  %v1527_v50 = vpop.permute.xlu0 %1526  ;;  %v1351_v56 = vsel %vm430_vm1, %v1276_v51, %v1332_v48  ;;  %v1567_v29 = vrot.slane %v1523_v4, 4 }
 0x127   : > { %v1540_v58 = vsel %vm391_vm2, %v1537_v55, 0.0  ;;  %v1531_v59 = vsel %vm380_vm3, %v1527_v50, 0.0  ;;  %1390 = vmatprep.subr.mxu0 %v1351_v56 }
 0x128   : > { %1391 = vmatpush1.msra.mxu0 %v1350_v62  ;;  %v1572_v1 = vrot.slane %v1540_v58, 4  ;;  %v1533_v39 = vmul.f32 %v1531_v59, %v3858_v17  ;;  %v1580_v23 = vsel %vm430_vm1, %v3940_v30, %v1567_v29 }
 0x12a   : > { %v1515_v15 = vpop.permute.xlu1 %1514  ;;  %v1542_v46 = vpop.permute.xlu0 %1541  ;;  %v1582_v9 = vsel %vm430_vm1, %v1533_v39, %v1572_v1 }
 0x12b   : > { %v1518_v52 = vsel %vm369_vm4, %v1515_v15, %v1517_v44  ;;  %v1545_v27 = vsel %vm399_vm0, %v1542_v46, %v1544_v37 }
 0x12c   : > { %v1522_v6 = vmul.f32 %v1518_v52, %v3864_v3  ;;  %v1549_v7 = vmul.f32 %v1545_v27, %v3864_v3 }
 0x12e   : > { %v1535_v54 = vpop.permute.xlu1 %1534  ;;  %3470 = vmatpush1.msk.msra.mxu1 %vm430_vm1, %v1549_v7  ;;  %v1525_v8 = vpop.permute.xlu0 %1524  ;;  %v1566_v13 = vrot.slane %v1522_v6, 4 }
 0x12f   : > { %v1538_v11 = vsel %vm391_vm2, %v1535_v54, %v1537_v55  ;;  %v1528_v12 = vsel %vm380_vm3, %v1525_v8, %v1527_v50  ;;  %1613 = vmatprep.subr.mxu1 %v1582_v9 }
 0x130   : > { %v1571_v14 = vrot.slane %v1538_v11, 4  ;;  %v1532_v16 = vmul.f32 %v1528_v12, %v3870_v26  ;;  %v1579_v25 = vsel %vm430_vm1, %v3971_v61, %v1566_v13 }
 0x132   : > { %v1253_v18 = vpop.permute.xlu1 %1252  ;;  %v1251_v19 = vpop.permute.xlu0 %1250  ;;  %v1581_v22 = vsel %vm430_vm1, %v1532_v16, %v1571_v14 }
 0x133   : > { %1614 = vmatpush1.msra.mxu1 %v1581_v22  ;;  %v1254_v28 = vsel %vm306_vm7, %v1251_v19, %v1253_v18  ;;  %v1257_v31 = vsel %vm306_vm7, 0.0, %v1251_v19 }
 0x134   : > { %1615 = vmatprep.subr.mxu1 %v1580_v23  ;;  %v1258_v36 = vmul.f32 %v1257_v31, %v3870_v26  ;;  %v1259_v37 = vmul.f32 %v1254_v28, %v3858_v17 }
 0x135   : > { %1616 = vmatpush1.msra.mxu1 %v1579_v25 }
 0x136   : > { %v1263_v32 = vpop.permute.xlu1 %1262  ;;  %v1261_v33 = vpop.permute.xlu0 %1260 }
 0x137   : > { %v1264_v34 = vsel %vm328_vm8, %v1261_v33, %v1263_v32  ;;  %v1266_v35 = vsel %vm328_vm8, 0.0, %v1261_v33 }
 0x138   : > { %v1325_v30 = vrot.slane %v1266_v35, 4  ;;  %v1326_v38 = vrot.slane %v1264_v34, 4 }
 0x13a   : > { %v1507_v41 = vpop.permute.xlu1 %1506  ;;  %v1505_v42 = vpop.permute.xlu0 %1504  ;;  %v1349_v61 = vsel %vm430_vm1, %v1259_v37, %v1326_v38  ;;  %v1348_v43 = vsel %vm430_vm1, %v1258_v36, %v1325_v30 }
 0x13b   : > { %v1508_v10 = vsel %vm358_vm5, %v1505_v42, %v1507_v41  ;;  %v1511_v44 = vsel %vm358_vm5, 0.0, %v1505_v42  ;;  %1392 = vmatprep.subr.mxu0 %v1349_v61 }
 0x13c   : > { %v1512_v57 = vmul.f32 %v1511_v44, %v3870_v26  ;;  %v1513_v45 = vmul.f32 %v1508_v10, %v3858_v17  ;;  %1393 = vmatpush1.msra.mxu0 %v1348_v43 }
 0x13d   : > { %3464 = vmatmul.mubr.msk.f32.vlgmr.msra.gmra.mxu0 %vm444_vm9, %v3994_v20 }
 0x13e   : > { %v1497_v47 = vpop.permute.xlu1 %1496  ;;  %v1495_v48 = vpop.permute.xlu0 %1494  ;;  %1880 = vmatprep.mubr.f32.mxu0 %v3600_v40  ;;  %v1558_v55 = vrot.slane %v1512_v57, 4  ;;  %v1559_v50 = vrot.slane %v1513_v45, 4 }
 0x13f   : > { %v1498_v51 = vsel %vm336_vm6, %v1495_v48, %v1497_v47  ;;  %v1501_v53 = vsel %vm336_vm6, 0.0, %v1495_v48 }
 0x140   : > { %v1502_v56 = vmul.f32 %v1501_v53, %v3864_v3  ;;  %v1503_v58 = vmul.f32 %v1498_v51, %v3839_v2 }
 0x142   : > { %v1478_v59 = vpop.permute.xlu1 %1477  ;;  %v1771_v62 = vpop.permute.xlu0 %1770  ;;  %v1578_v63 = vsel %vm430_vm1, %v1503_v58, %v1559_v50  ;;  %v1577_v1 = vsel %vm430_vm1, %v1502_v56, %v1558_v55 }
 0x143   : > { %v1775_v39 = vsel %vm399_vm0, %v1771_v62, 0.0  ;;  %1617 = vmatprep.subr.mxu1 %v1578_v63  ;;  %v1484_v6 = vsel %vm306_vm7, 0.0, %v1478_v59 }
 0x144   : > { %v1777_v15 = vmul.f32 %v1775_v39, %v3839_v2  ;;  %1618 = vmatpush1.msra.mxu1 %v1577_v1  ;;  %v1485_v12 = vmul.f32 %v1484_v6, %v3870_v26 }
 0x146   : > { %v1488_v46 = vpop.permute.xlu1 %1487  ;;  %3476 = vmatprep.subr.msk.mxu0 %vm430_vm1, %v1777_v15  ;;  %v1480_v4 = vpop.permute.xlu0 %1479 }
 0x147   : > { %v1493_v52 = vsel %vm328_vm8, 0.0, %v1488_v46  ;;  %v1481_v27 = vsel %vm306_vm7, %v1478_v59, %v1480_v4 }
 0x148   : > { %v1552_v8 = vrot.slane %v1493_v52, 4  ;;  %v1486_v29 = vmul.f32 %v1481_v27, %v3858_v17 }
 0x14a   : > { %v1744_v7 = vpop.permute.xlu1 %1743  ;;  %v1490_v54 = vpop.permute.xlu0 %1489  ;;  %v1575_v22 = vsel %vm430_vm1, %v1485_v12, %v1552_v8 }
 0x14b   : > { %v1491_v9 = vsel %vm328_vm8, %v1488_v46, %v1490_v54  ;;  %v1748_v23 = vsel %vm369_vm4, %v1744_v7, 0.0 }
 0x14c   : > { %v1553_v11 = vrot.slane %v1491_v9, 4  ;;  %v1750_v33 = vmul.f32 %v1748_v23, %v3839_v2 }
 0x14e   : > { %v1764_v13 = vpop.permute.xlu1 %1763  ;;  %v1754_v14 = vpop.permute.xlu0 %1753  ;;  %v1576_v16 = vsel %vm430_vm1, %v1486_v29, %v1553_v11  ;;  %v1794_v42 = vrot.slane %v1750_v33, 4 }
 0x14f   : > { %v1767_v18 = vsel %vm391_vm2, %v1764_v13, 0.0  ;;  %v1758_v19 = vsel %vm380_vm3, %v1754_v14, 0.0  ;;  %1619 = vmatprep.subr.mxu1 %v1576_v16 }
 0x150   : > { %1620 = vmatpush1.msra.mxu1 %v1575_v22  ;;  %v1799_v25 = vrot.slane %v1767_v18, 4  ;;  %v1760_v28 = vmul.f32 %v1758_v19, %v3858_v17  ;;  %v1807_v51 = vsel %vm430_vm1, %v4046_v21, %v1794_v42 }
 0x151   : > { %3471 = vmatmul.mubr.msk.f32.vlgmr.msra.gmra.mxu1 %vm444_vm9, %v3994_v20 }
 0x152   : > { %v1742_v31 = vpop.permute.xlu1 %1741  ;;  %v1769_v32 = vpop.permute.xlu0 %1768  ;;  %2107 = vmatprep.mubr.f32.mxu1 %v3600_v40  ;;  %v1809_v41 = vsel %vm430_vm1, %v1760_v28, %v1799_v25 }
 0x153   : > { %v1745_v34 = vsel %vm369_vm4, %v1742_v31, %v1744_v7  ;;  %v1772_v35 = vsel %vm399_vm0, %v1769_v32, %v1771_v62 }
 0x154   : > { %v1749_v36 = vmul.f32 %v1745_v34, %v3864_v3  ;;  %v1776_v37 = vmul.f32 %v1772_v35, %v3864_v3 }
 0x156   : > { %v1762_v30 = vpop.permute.xlu1 %1761  ;;  %3477 = vmatpush1.msk.msra.mxu0 %vm430_vm1, %v1776_v37  ;;  %v1752_v38 = vpop.permute.xlu0 %1751  ;;  %v1793_v10 = vrot.slane %v1749_v36, 4 }
 0x157   : > { %v1765_v61 = vsel %vm391_vm2, %v1762_v30, %v1764_v13  ;;  %v1755_v43 = vsel %vm380_vm3, %v1752_v38, %v1754_v14  ;;  %1840 = vmatprep.subr.mxu0 %v1809_v41 }
 0x158   : > { %v1798_v44 = vrot.slane %v1765_v61, 4  ;;  %v1759_v57 = vmul.f32 %v1755_v43, %v3870_v26  ;;  %v1806_v53 = vsel %vm430_vm1, %v4094_v49, %v1793_v10 }
 0x15a   : > { %v1734_v45 = vpop.permute.xlu1 %1733  ;;  %v1732_v47 = vpop.permute.xlu0 %1731  ;;  %v1808_v48 = vsel %vm430_vm1, %v1759_v57, %v1798_v44 }
 0x15b   : > { %1841 = vmatpush1.msra.mxu0 %v1808_v48  ;;  %v1735_v55 = vsel %vm358_vm5, %v1732_v47, %v1734_v45  ;;  %v1738_v50 = vsel %vm358_vm5, 0.0, %v1732_v47 }
 0x15c   : > { %1842 = vmatprep.subr.mxu0 %v1807_v51  ;;  %v1740_v62 = vmul.f32 %v1735_v55, %v3858_v17  ;;  %v1739_v21 = vmul.f32 %v1738_v50, %v3870_v26 }
 0x15d   : > { %1843 = vmatpush1.msra.mxu0 %v1806_v53 }
 0x15e   : > { %v1722_v56 = vpop.permute.xlu1 %1721  ;;  %v1998_v58 = vpop.permute.xlu0 %1997  ;;  %v1786_v4 = vrot.slane %v1740_v62, 4  ;;  %v1785_v27 = vrot.slane %v1739_v21, 4 }
 0x15f   : > { %v2002_v59 = vsel %vm399_vm0, %v1998_v58, 0.0  ;;  %v1728_v63 = vsel %vm336_vm6, 0.0, %v1722_v56 }
 0x160   : > { %v2004_v1 = vmul.f32 %v2002_v59, %v3839_v2  ;;  %v1729_v15 = vmul.f32 %v1728_v63, %v3864_v3 }
 0x162   : > { %v1971_v39 = vpop.permute.xlu1 %1970  ;;  %3483 = vmatprep.subr.msk.mxu1 %vm430_vm1, %v2004_v1  ;;  %v1724_v49 = vpop.permute.xlu0 %1723  ;;  %v1804_v29 = vsel %vm430_vm1, %v1729_v15, %v1785_v27 }
 0x163   : > { %v1725_v46 = vsel %vm336_vm6, %v1722_v56, %v1724_v49  ;;  %v1975_v11 = vsel %vm369_vm4, %v1971_v39, 0.0 }
 0x164   : > { %v1730_v52 = vmul.f32 %v1725_v46, %v3839_v2  ;;  %v1977_v18 = vmul.f32 %v1975_v11, %v3839_v2 }
 0x166   : > { %v1991_v6 = vpop.permute.xlu1 %1990  ;;  %v1981_v7 = vpop.permute.xlu0 %1980  ;;  %v1805_v54 = vsel %vm430_vm1, %v1730_v52, %v1786_v4  ;;  %v2021_v33 = vrot.slane %v1977_v18, 4 }
 0x167   : > { %v1994_v8 = vsel %vm391_vm2, %v1991_v6, 0.0  ;;  %v1985_v9 = vsel %vm380_vm3, %v1981_v7, 0.0  ;;  %1844 = vmatprep.subr.mxu0 %v1805_v54 }
 0x168   : > { %1845 = vmatpush1.msra.mxu0 %v1804_v29  ;;  %v2026_v12 = vrot.slane %v1994_v8, 4  ;;  %v1987_v13 = vmul.f32 %v1985_v9, %v3858_v17  ;;  %v2034_v61 = vsel %vm430_vm1, %v4131_v24, %v2021_v33 }
 0x16a   : > { %v1969_v14 = vpop.permute.xlu1 %1968  ;;  %v1996_v16 = vpop.permute.xlu0 %1995  ;;  %v2036_v32 = vsel %vm430_vm1, %v1987_v13, %v2026_v12 }
 0x16b   : > { %v1972_v19 = vsel %vm369_vm4, %v1969_v14, %v1971_v39  ;;  %v1999_v22 = vsel %vm399_vm0, %v1996_v16, %v1998_v58 }
 0x16c   : > { %v1976_v23 = vmul.f32 %v1972_v19, %v3864_v3  ;;  %v2003_v25 = vmul.f32 %v1999_v22, %v3864_v3  ;;  %v3582_v22 = vld [vmem:[%s4730_s1] sm:$0xff] }
 0x16e   : > { %v1989_v28 = vpop.permute.xlu1 %1988  ;;  %3484 = vmatpush1.msk.msra.mxu1 %vm430_vm1, %v2003_v25  ;;  %v1979_v31 = vpop.permute.xlu0 %1978  ;;  %v2020_v36 = vrot.slane %v1976_v23, 4 }
 0x16f   : > { %v1992_v34 = vsel %vm391_vm2, %v1989_v28, %v1991_v6  ;;  %v1982_v35 = vsel %vm380_vm3, %v1979_v31, %v1981_v7  ;;  %2067 = vmatprep.subr.mxu1 %v2036_v32 }
 0x170   : > { %v2025_v37 = vrot.slane %v1992_v34, 4  ;;  %v1986_v30 = vmul.f32 %v1982_v35, %v3870_v26  ;;  %v2033_v43 = vsel %vm430_vm1, %v4162_v60, %v2020_v36  ;;  %v4416_v35 = vld [vmem:[%s4732_s3] sm:$0xff] }
 0x172   : > { %v1707_v38 = vpop.permute.xlu1 %1706  ;;  %v1705_v41 = vpop.permute.xlu0 %1704  ;;  %v2035_v42 = vsel %vm430_vm1, %v1986_v30, %v2025_v37 }
 0x173   : > { %2068 = vmatpush1.msra.mxu1 %v2035_v42  ;;  %v1708_v10 = vsel %vm306_vm7, %v1705_v41, %v1707_v38  ;;  %v1711_v44 = vsel %vm306_vm7, 0.0, %v1705_v41 }
 0x174   : > { %2069 = vmatprep.subr.mxu1 %v2034_v61  ;;  %v1712_v51 = vmul.f32 %v1711_v44, %v3870_v26  ;;  %v1713_v53 = vmul.f32 %v1708_v10, %v3858_v17  ;;  %v255_v10 = vld [vmem:[%s4733_s4] sm:$0xff] }
 0x175   : > { %2070 = vmatpush1.msra.mxu1 %v2033_v43  ;;  %2116 = vperm.xlu1 %3581, %v255_v10  }
 0x176   : > { %v1717_v57 = vpop.permute.xlu1 %1716  ;;  %v1715_v45 = vpop.permute.xlu0 %1714 }
 0x177   : > { %v1718_v47 = vsel %vm328_vm8, %v1715_v45, %v1717_v57  ;;  %v1720_v48 = vsel %vm328_vm8, 0.0, %v1715_v45 }
 0x178   : > { %v1779_v24 = vrot.slane %v1720_v48, 4  ;;  %v1780_v55 = vrot.slane %v1718_v47, 4 }
 0x17a   : > { %v1961_v50 = vpop.permute.xlu1 %1960  ;;  %v1959_v56 = vpop.permute.xlu0 %1958  ;;  %v1803_v60 = vsel %vm430_vm1, %v1713_v53, %v1780_v55  ;;  %v1802_v58 = vsel %vm430_vm1, %v1712_v51, %v1779_v24 }
 0x17b   : > { %v1962_v59 = vsel %vm358_vm5, %v1959_v56, %v1961_v50  ;;  %v1965_v62 = vsel %vm358_vm5, 0.0, %v1959_v56  ;;  %1846 = vmatprep.subr.mxu0 %v1803_v60 }
 0x17c   : > { %v1966_v63 = vmul.f32 %v1965_v62, %v3870_v26  ;;  %v1967_v1 = vmul.f32 %v1962_v59, %v3858_v17  ;;  %1847 = vmatpush1.msra.mxu0 %v1802_v58 }
 0x17d   : > { %3478 = vmatmul.mubr.msk.f32.vlgmr.msra.gmra.mxu0 %vm444_vm9, %v3994_v20 }
 0x17e   : > { %v1951_v21 = vpop.permute.xlu1 %1950  ;;  %v1949_v39 = vpop.permute.xlu0 %1948  ;;  %2187 = vmatprep.mubr.f32.mxu0 %v3600_v40  ;;  %v2012_v46 = vrot.slane %v1966_v63, 4  ;;  %v2013_v4 = vrot.slane %v1967_v1, 4 }
 0x17f   : > { %v1952_v49 = vsel %vm336_vm6, %v1949_v39, %v1951_v21  ;;  %v1955_v15 = vsel %vm336_vm6, 0.0, %v1949_v39  ;;  %v520_v23 = vpop.f32.mrf.mxu0 }
 0x180   : > { %v1956_v52 = vmul.f32 %v1955_v15, %v3864_v3  ;;  %v1957_v27 = vmul.f32 %v1952_v49, %v3839_v2 }
 0x182   : > { %v1934_v6 = vpop.permute.xlu1 %1933  ;;  %v1932_v7 = vpop.permute.xlu0 %1931  ;;  %v2032_v54 = vsel %vm430_vm1, %v1957_v27, %v2013_v4  ;;  %v2031_v20 = vsel %vm430_vm1, %v1956_v52, %v2012_v46 }
 0x183   : > { %2071 = vmatprep.subr.mxu1 %v2032_v54  ;;  %v1935_v8 = vsel %vm306_vm7, %v1932_v7, %v1934_v6  ;;  %v1938_v9 = vsel %vm306_vm7, 0.0, %v1932_v7 }
 0x184   : > { %2072 = vmatpush1.msra.mxu1 %v2031_v20  ;;  %v1939_v2 = vmul.f32 %v1938_v9, %v3870_v26  ;;  %v1940_v13 = vmul.f32 %v1935_v8, %v3858_v17  ;;  %v522_v17 = vpop.f32.mrf.mxu0 }
 0x186   : > { %v1944_v29 = vpop.permute.xlu1 %1943  ;;  %v1942_v11 = vpop.permute.xlu0 %1941 }
 0x187   : > { %v1945_v12 = vsel %vm328_vm8, %v1942_v11, %v1944_v29  ;;  %v1947_v3 = vsel %vm328_vm8, 0.0, %v1942_v11 }
 0x188   : > { %v2006_v14 = vrot.slane %v1947_v3, 4  ;;  %v2007_v16 = vrot.slane %v1945_v12, 4 }
 0x18a   : > { %v2030_v18 = vsel %vm430_vm1, %v1940_v13, %v2007_v16  ;;  %v2029_v19 = vsel %vm430_vm1, %v1939_v2, %v2006_v14 }
 0x18b   : > { %2073 = vmatprep.subr.mxu1 %v2030_v18 }
 0x18c   : > { %2074 = vmatpush1.msra.mxu1 %v2029_v19 }
 0x18d   : > { %3485 = vmatmul.mubr.msk.f32.vlgmr.msra.gmra.mxu1 %vm444_vm9, %v3582_v22 }
 0x18e   : > { %2345 = vmatprep.mubr.f32.mxu1 %v3600_v40 }
 0x192   : > { %v747_v26 = vpop.f32.mrf.mxu1 }
 0x193   : > { %v4407_v25 = vpop.permute.xlu0 %441 }
 0x194   : > { %v749_v28 = vpop.f32.mrf.mxu1  ;;  %v748_v31 = vadd.f32 %v747_v26, %v4407_v25  ;;  %v523_v33 = vadd.f32 %v522_v17, %v4407_v25  ;;  %v521_v34 = vadd.f32 %v520_v23, %v4407_v25 }
 0x195   : > { %v750_v32 = vadd.f32 %v749_v28, %v4407_v25 }
 0x197   : > { %2149 = vmatprep.subr.mxu0 %v750_v32 }
 0x198   : > { %2150 = vmatpush1.msra.mxu0 %v748_v31 }
 0x199   : > { %2151 = vmatprep.subr.mxu0 %v523_v33 }
 0x19a   : > { %2152 = vmatpush1.msra.mxu0 %v521_v34 }
 0x19b   : > { %2153 = vmatprep.subr.mxu0 %v3600_v40 }
 0x19c   : > { %2154 = vmatpush1.msra.mxu0 %v3600_v40 }
 0x19d   : > { %3486 = vmatmul.mubr.msk.f32.vlgmr.msra.gmra.mxu0 %vm2119_vm10, %v4416_v35 }
 0x19e   : > { %2500 = vmatprep.mubr.f32.mxu0 %v3600_v40 }
 0x1be   : > { %v974_v36 = vpop.f32.mrf.mxu0 }
 0x1bf   : > { %v975_v30 = vadd.f32 %v974_v36, %v4407_v25 }
 0x1c0   : > { %v976_v37 = vpop.f32.mrf.mxu0 }
 0x1c1   : > { %v977_v38 = vadd.f32 %v976_v37, %v4407_v25 }
 0x1c3   : > { %2307 = vmatprep.subr.mxu1 %v977_v38 }
 0x1c4   : > { %2308 = vmatpush1.msra.mxu1 %v975_v30 }
 0x1c5   : > { %2309 = vmatprep.subr.mxu1 %v750_v32 }
 0x1c6   : > { %2310 = vmatpush1.msra.mxu1 %v748_v31 }
 0x1c7   : > { %2311 = vmatprep.subr.mxu1 %v523_v33 }
 0x1c8   : > { %2312 = vmatpush1.msra.mxu1 %v521_v34 }
 0x1c9   : > { %3494 = vmatmul.mubr.msk.f32.vlgmr.msra.gmra.mxu1 %vm2119_vm10, %v4416_v35 }
 0x1ca   : > { %2655 = vmatprep.mubr.f32.mxu1 %v3600_v40 }
 0x1d2   : > { %v1201_v41 = vpop.f32.mrf.mxu1 }
 0x1d3   : > { %v1202_v42 = vadd.f32 %v1201_v41, %v4407_v25 }
 0x1d4   : > { %v1203_v61 = vpop.f32.mrf.mxu1 }
 0x1d5   : > { %v1204_v43 = vadd.f32 %v1203_v61, %v4407_v25 }
 0x1d7   : > { %2462 = vmatprep.subr.mxu0 %v1204_v43 }
 0x1d8   : > { %2463 = vmatpush1.msra.mxu0 %v1202_v42 }
 0x1d9   : > { %2464 = vmatprep.subr.mxu0 %v977_v38 }
 0x1da   : > { %2465 = vmatpush1.msra.mxu0 %v975_v30 }
 0x1db   : > { %2466 = vmatprep.subr.mxu0 %v750_v32 }
 0x1dc   : > { %2467 = vmatpush1.msra.mxu0 %v748_v31 }
 0x1dd   : > { %3503 = vmatmul.mubr.msk.f32.vlgmr.msra.gmra.mxu0 %vm2119_vm10, %v4416_v35 }
 0x1de   : > { %2810 = vmatprep.mubr.f32.mxu0 %v3600_v40 }
 0x1fd   : > { %v1428_v44 = vpop.f32.mrf.mxu0 }
 0x1fe   : > { %v1429_v57 = vadd.f32 %v1428_v44, %v4407_v25 }
 0x1ff   : > { %v1430_v45 = vpop.f32.mrf.mxu0 }
 0x200   : > { %v1431_v47 = vadd.f32 %v1430_v45, %v4407_v25 }
 0x202   : > { %2617 = vmatprep.subr.mxu1 %v1431_v47 }
 0x203   : > { %2618 = vmatpush1.msra.mxu1 %v1429_v57 }
 0x204   : > { %2619 = vmatprep.subr.mxu1 %v1204_v43 }
 0x205   : > { %2620 = vmatpush1.msra.mxu1 %v1202_v42 }
 0x206   : > { %2621 = vmatprep.subr.mxu1 %v977_v38 }
 0x207   : > { %2622 = vmatpush1.msra.mxu1 %v975_v30 }
 0x208   : > { %3512 = vmatmul.mubr.msk.f32.vlgmr.msra.gmra.mxu1 %vm2119_vm10, %v4416_v35 }
 0x209   : > { %2965 = vmatprep.mubr.f32.mxu1 %v3600_v40 }
 0x211   : > { %v1655_v48 = vpop.f32.mrf.mxu1 }
 0x212   : > { %v1656_v51 = vadd.f32 %v1655_v48, %v4407_v25 }
 0x213   : > { %v1657_v53 = vpop.f32.mrf.mxu1 }
 0x214   : > { %v1658_v24 = vadd.f32 %v1657_v53, %v4407_v25 }
 0x216   : > { %2772 = vmatprep.subr.mxu0 %v1658_v24 }
 0x217   : > { %2773 = vmatpush1.msra.mxu0 %v1656_v51 }
 0x218   : > { %2774 = vmatprep.subr.mxu0 %v1431_v47 }
 0x219   : > { %2775 = vmatpush1.msra.mxu0 %v1429_v57 }
 0x21a   : > { %2776 = vmatprep.subr.mxu0 %v1204_v43 }
 0x21b   : > { %2777 = vmatpush1.msra.mxu0 %v1202_v42 }
 0x21c   : > { %3521 = vmatmul.mubr.msk.f32.vlgmr.msra.gmra.mxu0 %vm2119_vm10, %v4416_v35 }
 0x21d   : > { %3120 = vmatprep.mubr.f32.mxu0 %v3600_v40 }
 0x23d   : > { %v1882_v55 = vpop.f32.mrf.mxu0 }
 0x23e   : > { %v1883_v60 = vadd.f32 %v1882_v55, %v4407_v25 }
 0x23f   : > { %v1884_v50 = vpop.f32.mrf.mxu0 }
 0x240   : > { %v1885_v56 = vadd.f32 %v1884_v50, %v4407_v25 }
 0x242   : > { %2927 = vmatprep.subr.mxu1 %v1885_v56 }
 0x243   : > { %2928 = vmatpush1.msra.mxu1 %v1883_v60 }
 0x244   : > { %2929 = vmatprep.subr.mxu1 %v1658_v24 }
 0x245   : > { %2930 = vmatpush1.msra.mxu1 %v1656_v51 }
 0x246   : > { %2931 = vmatprep.subr.mxu1 %v1431_v47 }
 0x247   : > { %2932 = vmatpush1.msra.mxu1 %v1429_v57 }
 0x248   : > { %3530 = vmatmul.mubr.msk.f32.vlgmr.msra.gmra.mxu1 %vm2119_vm10, %v4416_v35 }
 0x249   : > { %3275 = vmatprep.mubr.f32.mxu1 %v3600_v40  ;;  %v4457_v40 = vpop.permute.xlu1 %2116 }
 0x24d   : > { %v2109_v58 = vpop.f32.mrf.mxu1 }
 0x24e   : > { %v2110_v63 = vadd.f32 %v2109_v58, %v4407_v25 }
 0x24f   : > { %v2111_v59 = vpop.f32.mrf.mxu1 }
 0x250   : > { %v2112_v62 = vadd.f32 %v2111_v59, %v4407_v25 }
 0x252   : > { %3082 = vmatprep.subr.mxu0 %v2112_v62  ;;  %3239 = vmatprep.subr.mxu1 %v2112_v62 }
 0x253   : > { %3083 = vmatpush1.msra.mxu0 %v2110_v63  ;;  %3240 = vmatpush1.msra.mxu1 %v2110_v63 }
 0x254   : > { %3084 = vmatprep.subr.mxu0 %v1885_v56  ;;  %3241 = vmatprep.subr.mxu1 %v1885_v56 }
 0x255   : > { %3085 = vmatpush1.msra.mxu0 %v1883_v60  ;;  %3242 = vmatpush1.msra.mxu1 %v1883_v60 }
 0x256   : > { %3086 = vmatprep.subr.mxu0 %v1658_v24  ;;  %3548 = vmatmul.mubr.msk.f32.vlgmr.msra.gmra.mxu1 %vm2119_vm10, %v4416_v35 }
 0x257   : > { %3087 = vmatpush1.msra.mxu0 %v1656_v51 }
 0x258   : > { %3539 = vmatmul.mubr.msk.f32.vlgmr.msra.gmra.mxu0 %vm2119_vm10, %v4416_v35 }
 0x25d   : > { %v2189_v1 = vpop.f32.mrf.mxu0 }
 0x25e   : > { %v2190_v21 = vadd.f32 %v2189_v1, %v4457_v40 }
 0x25f   : > { %v2191_v39 = vpop.f32.mrf.mxu0 }
 0x260   : > { %v2192_v49 = vadd.f32 %v2191_v39, %v4457_v40 }
 0x262   : > { %v2196_v15 = vcombine.low %v2190_v21, %v2192_v49  ;;  %v2197_v46 = vcombine.high %v2190_v21, %v2192_v49 }
 0x264   : > { %v2204_v4 = vrot.slane %v2196_v15, %v3657_v5  ;;  %v2211_v52 = vrot.slane %v2197_v46, %v3657_v5 }
 0x266   : > { %v2212_v6 = vcombine.high %v2204_v4, %v2204_v4  ;;  %v2213_v7 = vcombine.high %v2211_v52, %v2211_v52  ;;  %v2220_v54 = vrot.slane %v2204_v4, %v3657_v5  ;;  %v2227_v20 = vrot.slane %v2211_v52, %v3657_v5 }
 0x268   : > { %v2234_v8 = vrot.slane %v2212_v6, %v3657_v5  ;;  %v2241_v9 = vrot.slane %v2213_v7, %v3657_v5  ;;  %v2242_v29 = vcombine.high %v2220_v54, %v2220_v54  ;;  %v2243_v11 = vcombine.high %v2227_v20, %v2227_v20  ;;  %2258 = vst.msk [vmem:[%s4467_s30] ss:$8 sm:$0x3] %vm4470_vm11, %v2220_v54 }
 0x269   : > { %3490 = vst.msk [vmem:[%s4467_s30 + $0x40] ss:$8 sm:$0x3] %vm4470_vm11, %v2227_v20 }
 0x26a   : > { %v2244_v0 = vcombine.high %v2234_v8, %v2234_v8  ;;  %v2245_v12 = vcombine.high %v2241_v9, %v2241_v9  ;;  %3487 = vst.msk [vmem:[%s4467_s30 + $0x10] ss:$8 sm:$0x3] %vm4470_vm11, %v2234_v8  ;;  %3488 = vst.msk [vmem:[%s4467_s30 + $0x20] ss:$8 sm:$0x3] %vm4470_vm11, %v2242_v29 }
 0x26b   : > { %3491 = vst.msk [vmem:[%s4467_s30 + $0x50] ss:$8 sm:$0x3] %vm4470_vm11, %v2241_v9  ;;  %3492 = vst.msk [vmem:[%s4467_s30 + $0x60] ss:$8 sm:$0x3] %vm4470_vm11, %v2243_v11 }
 0x26c   : > { %3489 = vst.msk [vmem:[%s4467_s30 + $0x30] ss:$8 sm:$0x3] %vm4470_vm11, %v2244_v0  ;;  %3493 = vst.msk [vmem:[%s4467_s30 + $0x70] ss:$8 sm:$0x3] %vm4470_vm11, %v2245_v12 }
 0x289   : > { %v2347_v3 = vpop.f32.mrf.mxu1 }
 0x28a   : > { %v2348_v2 = vadd.f32 %v2347_v3, %v4457_v40 }
 0x28b   : > { %v2349_v13 = vpop.f32.mrf.mxu1 }
 0x28c   : > { %v2350_v14 = vadd.f32 %v2349_v13, %v4457_v40 }
 0x28e   : > { %v2354_v16 = vcombine.low %v2348_v2, %v2350_v14  ;;  %v2355_v18 = vcombine.high %v2348_v2, %v2350_v14 }
 0x290   : > { %v2362_v19 = vrot.slane %v2354_v16, %v3657_v5  ;;  %v2369_v22 = vrot.slane %v2355_v18, %v3657_v5 }
 0x292   : > { %v2370_v23 = vcombine.high %v2362_v19, %v2362_v19  ;;  %v2371_v26 = vcombine.high %v2369_v22, %v2369_v22  ;;  %v2378_v25 = vrot.slane %v2362_v19, %v3657_v5  ;;  %v2385_v17 = vrot.slane %v2369_v22, %v3657_v5 }
 0x294   : > { %v2392_v28 = vrot.slane %v2370_v23, %v3657_v5  ;;  %v2399_v31 = vrot.slane %v2371_v26, %v3657_v5  ;;  %v2400_v32 = vcombine.high %v2378_v25, %v2378_v25  ;;  %v2401_v33 = vcombine.high %v2385_v17, %v2385_v17  ;;  %3495 = vst.msk [vmem:[%s4467_s30 + $0x1] ss:$8 sm:$0x3] %vm4470_vm11, %v2378_v25 }
 0x295   : > { %3499 = vst.msk [vmem:[%s4467_s30 + $0x41] ss:$8 sm:$0x3] %vm4470_vm11, %v2385_v17 }
 0x296   : > { %v2402_v34 = vcombine.high %v2392_v28, %v2392_v28  ;;  %v2403_v35 = vcombine.high %v2399_v31, %v2399_v31  ;;  %3496 = vst.msk [vmem:[%s4467_s30 + $0x11] ss:$8 sm:$0x3] %vm4470_vm11, %v2392_v28  ;;  %3497 = vst.msk [vmem:[%s4467_s30 + $0x21] ss:$8 sm:$0x3] %vm4470_vm11, %v2400_v32 }
 0x297   : > { %3500 = vst.msk [vmem:[%s4467_s30 + $0x51] ss:$8 sm:$0x3] %vm4470_vm11, %v2399_v31  ;;  %3501 = vst.msk [vmem:[%s4467_s30 + $0x61] ss:$8 sm:$0x3] %vm4470_vm11, %v2401_v33 }
 0x298   : > { %3498 = vst.msk [vmem:[%s4467_s30 + $0x31] ss:$8 sm:$0x3] %vm4470_vm11, %v2402_v34  ;;  %3502 = vst.msk [vmem:[%s4467_s30 + $0x71] ss:$8 sm:$0x3] %vm4470_vm11, %v2403_v35 }
 0x29d   : > { %v2502_v36 = vpop.f32.mrf.mxu0 }
 0x29e   : > { %v2503_v37 = vadd.f32 %v2502_v36, %v4457_v40 }
 0x29f   : > { %v2504_v30 = vpop.f32.mrf.mxu0 }
 0x2a0   : > { %v2505_v38 = vadd.f32 %v2504_v30, %v4457_v40 }
 0x2a2   : > { %v2509_v41 = vcombine.low %v2503_v37, %v2505_v38  ;;  %v2510_v42 = vcombine.high %v2503_v37, %v2505_v38 }
 0x2a4   : > { %v2517_v61 = vrot.slane %v2509_v41, %v3657_v5  ;;  %v2524_v43 = vrot.slane %v2510_v42, %v3657_v5 }
 0x2a6   : > { %v2525_v10 = vcombine.high %v2517_v61, %v2517_v61  ;;  %v2526_v44 = vcombine.high %v2524_v43, %v2524_v43  ;;  %v2533_v57 = vrot.slane %v2517_v61, %v3657_v5  ;;  %v2540_v45 = vrot.slane %v2524_v43, %v3657_v5 }
 0x2a8   : > { %v2547_v47 = vrot.slane %v2525_v10, %v3657_v5  ;;  %v2554_v48 = vrot.slane %v2526_v44, %v3657_v5  ;;  %v2555_v51 = vcombine.high %v2533_v57, %v2533_v57  ;;  %v2556_v53 = vcombine.high %v2540_v45, %v2540_v45  ;;  %3504 = vst.msk [vmem:[%s4467_s30 + $0x2] ss:$8 sm:$0x3] %vm4470_vm11, %v2533_v57 }
 0x2a9   : > { %3508 = vst.msk [vmem:[%s4467_s30 + $0x42] ss:$8 sm:$0x3] %vm4470_vm11, %v2540_v45 }
 0x2aa   : > { %v2557_v24 = vcombine.high %v2547_v47, %v2547_v47  ;;  %v2558_v55 = vcombine.high %v2554_v48, %v2554_v48  ;;  %3505 = vst.msk [vmem:[%s4467_s30 + $0x12] ss:$8 sm:$0x3] %vm4470_vm11, %v2547_v47  ;;  %3506 = vst.msk [vmem:[%s4467_s30 + $0x22] ss:$8 sm:$0x3] %vm4470_vm11, %v2555_v51 }
 0x2ab   : > { %3509 = vst.msk [vmem:[%s4467_s30 + $0x52] ss:$8 sm:$0x3] %vm4470_vm11, %v2554_v48  ;;  %3510 = vst.msk [vmem:[%s4467_s30 + $0x62] ss:$8 sm:$0x3] %vm4470_vm11, %v2556_v53 }
 0x2ac   : > { %3507 = vst.msk [vmem:[%s4467_s30 + $0x32] ss:$8 sm:$0x3] %vm4470_vm11, %v2557_v24  ;;  %3511 = vst.msk [vmem:[%s4467_s30 + $0x72] ss:$8 sm:$0x3] %vm4470_vm11, %v2558_v55 }
 0x2c8   : > { %v2657_v50 = vpop.f32.mrf.mxu1 }
 0x2c9   : > { %v2658_v56 = vadd.f32 %v2657_v50, %v4457_v40 }
 0x2ca   : > { %v2659_v60 = vpop.f32.mrf.mxu1 }
 0x2cb   : > { %v2660_v58 = vadd.f32 %v2659_v60, %v4457_v40 }
 0x2cd   : > { %v2664_v59 = vcombine.low %v2658_v56, %v2660_v58  ;;  %v2665_v62 = vcombine.high %v2658_v56, %v2660_v58 }
 0x2cf   : > { %v2672_v63 = vrot.slane %v2664_v59, %v3657_v5  ;;  %v2679_v1 = vrot.slane %v2665_v62, %v3657_v5 }
 0x2d1   : > { %v2680_v21 = vcombine.high %v2672_v63, %v2672_v63  ;;  %v2681_v39 = vcombine.high %v2679_v1, %v2679_v1  ;;  %v2688_v49 = vrot.slane %v2672_v63, %v3657_v5  ;;  %v2695_v15 = vrot.slane %v2679_v1, %v3657_v5 }
 0x2d3   : > { %v2702_v46 = vrot.slane %v2680_v21, %v3657_v5  ;;  %v2709_v4 = vrot.slane %v2681_v39, %v3657_v5  ;;  %v2710_v52 = vcombine.high %v2688_v49, %v2688_v49  ;;  %v2711_v6 = vcombine.high %v2695_v15, %v2695_v15  ;;  %3513 = vst.msk [vmem:[%s4467_s30 + $0x3] ss:$8 sm:$0x3] %vm4470_vm11, %v2688_v49 }
 0x2d4   : > { %3517 = vst.msk [vmem:[%s4467_s30 + $0x43] ss:$8 sm:$0x3] %vm4470_vm11, %v2695_v15 }
 0x2d5   : > { %v2712_v7 = vcombine.high %v2702_v46, %v2702_v46  ;;  %v2713_v54 = vcombine.high %v2709_v4, %v2709_v4  ;;  %3514 = vst.msk [vmem:[%s4467_s30 + $0x13] ss:$8 sm:$0x3] %vm4470_vm11, %v2702_v46  ;;  %3515 = vst.msk [vmem:[%s4467_s30 + $0x23] ss:$8 sm:$0x3] %vm4470_vm11, %v2710_v52 }
 0x2d6   : > { %3518 = vst.msk [vmem:[%s4467_s30 + $0x53] ss:$8 sm:$0x3] %vm4470_vm11, %v2709_v4  ;;  %3519 = vst.msk [vmem:[%s4467_s30 + $0x63] ss:$8 sm:$0x3] %vm4470_vm11, %v2711_v6 }
 0x2d7   : > { %3516 = vst.msk [vmem:[%s4467_s30 + $0x33] ss:$8 sm:$0x3] %vm4470_vm11, %v2712_v7  ;;  %3520 = vst.msk [vmem:[%s4467_s30 + $0x73] ss:$8 sm:$0x3] %vm4470_vm11, %v2713_v54 }
 0x2dc   : > { %v2812_v20 = vpop.f32.mrf.mxu0 }
 0x2dd   : > { %v2813_v8 = vadd.f32 %v2812_v20, %v4457_v40 }
 0x2de   : > { %v2814_v9 = vpop.f32.mrf.mxu0 }
 0x2df   : > { %v2815_v29 = vadd.f32 %v2814_v9, %v4457_v40 }
 0x2e1   : > { %v2819_v11 = vcombine.low %v2813_v8, %v2815_v29  ;;  %v2820_v0 = vcombine.high %v2813_v8, %v2815_v29 }
 0x2e3   : > { %v2827_v12 = vrot.slane %v2819_v11, %v3657_v5  ;;  %v2834_v3 = vrot.slane %v2820_v0, %v3657_v5 }
 0x2e5   : > { %v2835_v2 = vcombine.high %v2827_v12, %v2827_v12  ;;  %v2836_v13 = vcombine.high %v2834_v3, %v2834_v3  ;;  %v2843_v14 = vrot.slane %v2827_v12, %v3657_v5  ;;  %v2850_v16 = vrot.slane %v2834_v3, %v3657_v5 }
 0x2e7   : > { %v2857_v18 = vrot.slane %v2835_v2, %v3657_v5  ;;  %v2864_v19 = vrot.slane %v2836_v13, %v3657_v5  ;;  %v2865_v22 = vcombine.high %v2843_v14, %v2843_v14  ;;  %v2866_v23 = vcombine.high %v2850_v16, %v2850_v16  ;;  %3522 = vst.msk [vmem:[%s4467_s30 + $0x4] ss:$8 sm:$0x3] %vm4470_vm11, %v2843_v14 }
 0x2e8   : > { %3526 = vst.msk [vmem:[%s4467_s30 + $0x44] ss:$8 sm:$0x3] %vm4470_vm11, %v2850_v16 }
 0x2e9   : > { %v2867_v26 = vcombine.high %v2857_v18, %v2857_v18  ;;  %v2868_v25 = vcombine.high %v2864_v19, %v2864_v19  ;;  %3523 = vst.msk [vmem:[%s4467_s30 + $0x14] ss:$8 sm:$0x3] %vm4470_vm11, %v2857_v18  ;;  %3524 = vst.msk [vmem:[%s4467_s30 + $0x24] ss:$8 sm:$0x3] %vm4470_vm11, %v2865_v22 }
 0x2ea   : > { %3527 = vst.msk [vmem:[%s4467_s30 + $0x54] ss:$8 sm:$0x3] %vm4470_vm11, %v2864_v19  ;;  %3528 = vst.msk [vmem:[%s4467_s30 + $0x64] ss:$8 sm:$0x3] %vm4470_vm11, %v2866_v23 }
 0x2eb   : > { %3525 = vst.msk [vmem:[%s4467_s30 + $0x34] ss:$8 sm:$0x3] %vm4470_vm11, %v2867_v26  ;;  %3529 = vst.msk [vmem:[%s4467_s30 + $0x74] ss:$8 sm:$0x3] %vm4470_vm11, %v2868_v25 }
 0x308   : > { %v2967_v17 = vpop.f32.mrf.mxu1 }
 0x309   : > { %v2968_v28 = vadd.f32 %v2967_v17, %v4457_v40 }
 0x30a   : > { %v2969_v31 = vpop.f32.mrf.mxu1 }
 0x30b   : > { %v2970_v32 = vadd.f32 %v2969_v31, %v4457_v40 }
 0x30d   : > { %v2974_v33 = vcombine.low %v2968_v28, %v2970_v32  ;;  %v2975_v34 = vcombine.high %v2968_v28, %v2970_v32 }
 0x30f   : > { %v2982_v35 = vrot.slane %v2974_v33, %v3657_v5  ;;  %v2989_v36 = vrot.slane %v2975_v34, %v3657_v5 }
 0x311   : > { %v2990_v37 = vcombine.high %v2982_v35, %v2982_v35  ;;  %v2991_v30 = vcombine.high %v2989_v36, %v2989_v36  ;;  %v2998_v38 = vrot.slane %v2982_v35, %v3657_v5  ;;  %v3005_v41 = vrot.slane %v2989_v36, %v3657_v5 }
 0x313   : > { %v3012_v42 = vrot.slane %v2990_v37, %v3657_v5  ;;  %v3019_v61 = vrot.slane %v2991_v30, %v3657_v5  ;;  %v3020_v43 = vcombine.high %v2998_v38, %v2998_v38  ;;  %v3021_v10 = vcombine.high %v3005_v41, %v3005_v41  ;;  %3531 = vst.msk [vmem:[%s4467_s30 + $0x5] ss:$8 sm:$0x3] %vm4470_vm11, %v2998_v38 }
 0x314   : > { %3535 = vst.msk [vmem:[%s4467_s30 + $0x45] ss:$8 sm:$0x3] %vm4470_vm11, %v3005_v41 }
 0x315   : > { %v3022_v44 = vcombine.high %v3012_v42, %v3012_v42  ;;  %v3023_v57 = vcombine.high %v3019_v61, %v3019_v61  ;;  %3532 = vst.msk [vmem:[%s4467_s30 + $0x15] ss:$8 sm:$0x3] %vm4470_vm11, %v3012_v42  ;;  %3533 = vst.msk [vmem:[%s4467_s30 + $0x25] ss:$8 sm:$0x3] %vm4470_vm11, %v3020_v43 }
 0x316   : > { %3536 = vst.msk [vmem:[%s4467_s30 + $0x55] ss:$8 sm:$0x3] %vm4470_vm11, %v3019_v61  ;;  %3537 = vst.msk [vmem:[%s4467_s30 + $0x65] ss:$8 sm:$0x3] %vm4470_vm11, %v3021_v10  ;;  %v3277_v45 = vpop.f32.mrf.mxu1 }
 0x317   : > { %3534 = vst.msk [vmem:[%s4467_s30 + $0x35] ss:$8 sm:$0x3] %vm4470_vm11, %v3022_v44  ;;  %3538 = vst.msk [vmem:[%s4467_s30 + $0x75] ss:$8 sm:$0x3] %vm4470_vm11, %v3023_v57  ;;  %v3278_v47 = vadd.f32 %v3277_v45, %v4457_v40 }
 0x318   : > { %v3122_v48 = vpop.f32.mrf.mxu0  ;;  %v3279_v51 = vpop.f32.mrf.mxu1 }
 0x319   : > { %v3280_v53 = vadd.f32 %v3279_v51, %v4457_v40  ;;  %v3123_v55 = vadd.f32 %v3122_v48, %v4457_v40 }
 0x31a   : > { %v3124_v24 = vpop.f32.mrf.mxu0 }
 0x31b   : > { %v3284_v50 = vcombine.low %v3278_v47, %v3280_v53  ;;  %v3285_v56 = vcombine.high %v3278_v47, %v3280_v53  ;;  %v3125_v60 = vadd.f32 %v3124_v24, %v4457_v40 }
 0x31d   : > { %v3292_v58 = vrot.slane %v3284_v50, %v3657_v5  ;;  %v3299_v59 = vrot.slane %v3285_v56, %v3657_v5  ;;  %v3129_v62 = vcombine.low %v3123_v55, %v3125_v60  ;;  %v3130_v63 = vcombine.high %v3123_v55, %v3125_v60 }
 0x31f   : > { %v3300_v1 = vcombine.high %v3292_v58, %v3292_v58  ;;  %v3301_v21 = vcombine.high %v3299_v59, %v3299_v59  ;;  %v3308_v39 = vrot.slane %v3292_v58, %v3657_v5  ;;  %v3315_v49 = vrot.slane %v3299_v59, %v3657_v5 }
 0x320   : > { %v3137_v15 = vrot.slane %v3129_v62, %v3657_v5  ;;  %v3144_v40 = vrot.slane %v3130_v63, %v3657_v5 }
 0x321   : > { %v3322_v46 = vrot.slane %v3300_v1, %v3657_v5  ;;  %v3329_v4 = vrot.slane %v3301_v21, %v3657_v5  ;;  %v3330_v52 = vcombine.high %v3308_v39, %v3308_v39  ;;  %v3331_v6 = vcombine.high %v3315_v49, %v3315_v49  ;;  %3549 = vst.msk [vmem:[%s4467_s30 + $0x7] ss:$8 sm:$0x3] %vm4470_vm11, %v3308_v39 }
 0x322   : > { %3553 = vst.msk [vmem:[%s4467_s30 + $0x47] ss:$8 sm:$0x3] %vm4470_vm11, %v3315_v49  ;;  %v3145_v7 = vcombine.high %v3137_v15, %v3137_v15  ;;  %v3146_v54 = vcombine.high %v3144_v40, %v3144_v40  ;;  %v3153_v20 = vrot.slane %v3137_v15, %v3657_v5  ;;  %v3160_v8 = vrot.slane %v3144_v40, %v3657_v5 }
 0x323   : > { %v3332_v9 = vcombine.high %v3322_v46, %v3322_v46  ;;  %v3333_v29 = vcombine.high %v3329_v4, %v3329_v4  ;;  %3550 = vst.msk [vmem:[%s4467_s30 + $0x17] ss:$8 sm:$0x3] %vm4470_vm11, %v3322_v46  ;;  %3551 = vst.msk [vmem:[%s4467_s30 + $0x27] ss:$8 sm:$0x3] %vm4470_vm11, %v3330_v52 }
 0x324   : > { %3554 = vst.msk [vmem:[%s4467_s30 + $0x57] ss:$8 sm:$0x3] %vm4470_vm11, %v3329_v4  ;;  %3555 = vst.msk [vmem:[%s4467_s30 + $0x67] ss:$8 sm:$0x3] %vm4470_vm11, %v3331_v6  ;;  %v3167_v11 = vrot.slane %v3145_v7, %v3657_v5  ;;  %v3174_v0 = vrot.slane %v3146_v54, %v3657_v5  ;;  %v3175_v12 = vcombine.high %v3153_v20, %v3153_v20 }
 0x325   : > { %v3176_v3 = vcombine.high %v3160_v8, %v3160_v8  ;;  %3540 = vst.msk [vmem:[%s4467_s30 + $0x6] ss:$8 sm:$0x3] %vm4470_vm11, %v3153_v20  ;;  %3544 = vst.msk [vmem:[%s4467_s30 + $0x46] ss:$8 sm:$0x3] %vm4470_vm11, %v3160_v8 }
 0x326   : > { %3552 = vst.msk [vmem:[%s4467_s30 + $0x37] ss:$8 sm:$0x3] %vm4470_vm11, %v3332_v9  ;;  %3556 = vst.msk [vmem:[%s4467_s30 + $0x77] ss:$8 sm:$0x3] %vm4470_vm11, %v3333_v29  ;;  %v3177_v2 = vcombine.high %v3167_v11, %v3167_v11  ;;  %v3178_v13 = vcombine.high %v3174_v0, %v3174_v0 }
 0x327   : > { %3541 = vst.msk [vmem:[%s4467_s30 + $0x16] ss:$8 sm:$0x3] %vm4470_vm11, %v3167_v11  ;;  %3542 = vst.msk [vmem:[%s4467_s30 + $0x26] ss:$8 sm:$0x3] %vm4470_vm11, %v3175_v12 }
 0x328   : > { %3545 = vst.msk [vmem:[%s4467_s30 + $0x56] ss:$8 sm:$0x3] %vm4470_vm11, %v3174_v0  ;;  %3546 = vst.msk [vmem:[%s4467_s30 + $0x66] ss:$8 sm:$0x3] %vm4470_vm11, %v3176_v3 }
 0x329   : > { %3543 = vst.msk [vmem:[%s4467_s30 + $0x36] ss:$8 sm:$0x3] %vm4470_vm11, %v3177_v2  ;;  %3547 = vst.msk [vmem:[%s4467_s30 + $0x76] ss:$8 sm:$0x3] %vm4470_vm11, %v3178_v13 }
 0x32a PF: > { %s16_s21 = sadd.s32 1, %s3589_s21  }
 0x32b   : > { %p13_p4 = scmp.ge.s32.totalorder %s16_s21, 4  }
 0x32d   :  { %15 = sbr.rel (!%p13_p4) target bundleno = 1 (0x1), region = 169 }

</bundles_post_ra>
